<compile_context>
chip_gen: v7x
topology: tpu7x:2x2x1
jax: 0.10.0
libtpu: 0.0.40
codegen_flags: <defaults>
</compile_context>

<pallas_src>
import math
import functools

import jax
import jax.numpy as jnp
from jax import lax
from jax.experimental import pallas as pl
from jax.experimental.pallas import tpu as pltpu


# ---------------------------------------------------------------------------
# VMEM limit: generation dependent (v5e/v6e: 128 MiB physical, v7x: 64 MiB).
# ---------------------------------------------------------------------------
@functools.lru_cache(maxsize=None)
def _vmem_limit_bytes():
    cap = 64 * 1024 * 1024
    try:
        info = pltpu.get_tpu_info()
        cap = int(getattr(info, "vmem_capacity_bytes", cap) or cap)
    except Exception:
        pass
    # use ~3/4 of physical, capped at 96 MiB
    return int(min(cap * 3 // 4, 96 * 1024 * 1024))


def _compiler_params(dim_sem):
    return pltpu.CompilerParams(dimension_semantics=dim_sem,
                                vmem_limit_bytes=_vmem_limit_bytes())


# ---------------------------------------------------------------------------
# Tiling helpers
# ---------------------------------------------------------------------------
def _pick_tile(dim, align, target):
    """Largest multiple of `align` that divides dim and is <= target, else the
    full dim (the 'block equals full array dim' escape hatch)."""
    if dim % align == 0:
        t = min(target, dim)
        t -= t % align
        t = max(t, align)
        while dim % t:
            t -= align
        return t
    return dim


def _maybe_pad(a, axis, mult, threshold):
    """Zero-pad `axis` to a multiple of `mult` when it is large AND misaligned
    (small dims just use a single full-extent tile)."""
    size = a.shape[axis]
    if size % mult == 0 or size <= threshold:
        return a
    pads = [(0, 0)] * a.ndim
    pads[axis] = (0, (-size) % mult)
    return jnp.pad(a, pads)


# ---------------------------------------------------------------------------
# Tiled K-accumulating matmul:  y = x @ w.T (+ residual)
# w in PyTorch (N, K) layout; contraction on last dim of both (no transpose).
# ---------------------------------------------------------------------------
def _matmul_kernel(x_ref, w_ref, o_ref, acc_ref):
    @pl.when(pl.program_id(2) == 0)
    def _():
        acc_ref[...] = jnp.zeros_like(acc_ref)

    acc_ref[...] += lax.dot_general(
        x_ref[...], w_ref[...],
        dimension_numbers=(((1,), (1,)), ((), ())),
        preferred_element_type=jnp.float32)

    @pl.when(pl.program_id(2) == pl.num_programs(2) - 1)
    def _():
        o_ref[...] = acc_ref[...].astype(o_ref.dtype)


def _matmul_res_kernel(x_ref, w_ref, r_ref, o_ref, acc_ref):
    @pl.when(pl.program_id(2) == 0)
    def _():
        acc_ref[...] = jnp.zeros_like(acc_ref)

    acc_ref[...] += lax.dot_general(
        x_ref[...], w_ref[...],
        dimension_numbers=(((1,), (1,)), ((), ())),
        preferred_element_type=jnp.float32)

    @pl.when(pl.program_id(2) == pl.num_programs(2) - 1)
    def _():
        o_ref[...] = (acc_ref[...] + r_ref[...].astype(jnp.float32)
                      ).astype(o_ref.dtype)


def linear_no_bias(x2d, w, residual=None, out_dtype=None):
    """y = x2d @ w.T (+ residual).  x2d / w expected bf16; fp32 accumulation."""
    M, K = x2d.shape
    N, K2 = w.shape
    assert K == K2
    if out_dtype is None:
        out_dtype = residual.dtype if residual is not None else x2d.dtype

    xp = _maybe_pad(_maybe_pad(x2d, 0, 16, 512), 1, 128, 1024)
    wp = _maybe_pad(_maybe_pad(w, 0, 128, 1024), 1, 128, 1024)
    rp = residual
    if residual is not None:
        rp = _maybe_pad(_maybe_pad(residual, 0, 16, 512), 1, 128, 1024)
    Mp, Kp = xp.shape
    Np = wp.shape[0]

    tm = _pick_tile(Mp, 16, 512)
    tn = _pick_tile(Np, 128, 1024)
    tk = _pick_tile(Kp, 128, 1024)
    grid = (Mp // tm, Np // tn, Kp // tk)

    x_spec = pl.BlockSpec((tm, tk), lambda i, j, k: (i, k))
    w_spec = pl.BlockSpec((tn, tk), lambda i, j, k: (j, k))
    o_spec = pl.BlockSpec((tm, tn), lambda i, j, k: (i, j))
    cp = _compiler_params(("parallel", "parallel", "arbitrary"))

    if residual is None:
        out = pl.pallas_call(
            _matmul_kernel,
            out_shape=jax.ShapeDtypeStruct((Mp, Np), out_dtype),
            grid=grid,
            in_specs=[x_spec, w_spec],
            out_specs=o_spec,
            scratch_shapes=[pltpu.VMEM((tm, tn), jnp.float32)],
            compiler_params=cp,
        )(xp, wp)
    else:
        out = pl.pallas_call(
            _matmul_res_kernel,
            out_shape=jax.ShapeDtypeStruct((Mp, Np), out_dtype),
            grid=grid,
            in_specs=[x_spec, w_spec, o_spec],
            out_specs=o_spec,
            scratch_shapes=[pltpu.VMEM((tm, tn), jnp.float32)],
            compiler_params=cp,
        )(xp, wp, rp)

    if (Mp, Np) != (M, N):
        out = out[:M, :N]
    return out


# ---------------------------------------------------------------------------
# Fused SwiGLU up-projection:  silu(x @ w1.T) * (x @ w2.T)
# ---------------------------------------------------------------------------
def _gated_mlp_kernel(x_ref, w1_ref, w2_ref, o_ref, acc1_ref, acc2_ref):
    @pl.when(pl.program_id(2) == 0)
    def _():
        acc1_ref[...] = jnp.zeros_like(acc1_ref)
        acc2_ref[...] = jnp.zeros_like(acc2_ref)

    dn = (((1,), (1,)), ((), ()))
    acc1_ref[...] += lax.dot_general(x_ref[...], w1_ref[...], dn,
                                     preferred_element_type=jnp.float32)
    acc2_ref[...] += lax.dot_general(x_ref[...], w2_ref[...], dn,
                                     preferred_element_type=jnp.float32)

    @pl.when(pl.program_id(2) == pl.num_programs(2) - 1)
    def _():
        a = acc1_ref[...]
        o_ref[...] = (a * lax.logistic(a) * acc2_ref[...]).astype(o_ref.dtype)


def gated_silu_up(x2d, w1, w2, out_dtype=jnp.bfloat16):
    M, K = x2d.shape
    N = w1.shape[0]

    xp = _maybe_pad(_maybe_pad(x2d, 0, 16, 512), 1, 128, 1024)
    w1p = _maybe_pad(_maybe_pad(w1, 0, 128, 1024), 1, 128, 1024)
    w2p = _maybe_pad(_maybe_pad(w2, 0, 128, 1024), 1, 128, 1024)
    Mp, Kp = xp.shape
    Np = w1p.shape[0]

    tm = _pick_tile(Mp, 16, 512)
    tn = _pick_tile(Np, 128, 512)
    tk = _pick_tile(Kp, 128, 1024)

    out = pl.pallas_call(
        _gated_mlp_kernel,
        out_shape=jax.ShapeDtypeStruct((Mp, Np), out_dtype),
        grid=(Mp // tm, Np // tn, Kp // tk),
        in_specs=[pl.BlockSpec((tm, tk), lambda i, j, k: (i, k)),
                  pl.BlockSpec((tn, tk), lambda i, j, k: (j, k)),
                  pl.BlockSpec((tn, tk), lambda i, j, k: (j, k))],
        out_specs=pl.BlockSpec((tm, tn), lambda i, j, k: (i, j)),
        scratch_shapes=[pltpu.VMEM((tm, tn), jnp.float32),
                        pltpu.VMEM((tm, tn), jnp.float32)],
        compiler_params=_compiler_params(("parallel", "parallel", "arbitrary")),
    )(xp, w1p, w2p)

    if (Mp, Np) != (M, N):
        out = out[:M, :N]
    return out


# ---------------------------------------------------------------------------
# RMSNorm (fp32 math, bf16 output feeding the next matmul)
# ---------------------------------------------------------------------------
def _rmsnorm_kernel(x_ref, s_ref, o_ref, *, eps):
    x = x_ref[...].astype(jnp.float32)
    var = jnp.mean(x * x, axis=-1, keepdims=True)
    o_ref[...] = (x * lax.rsqrt(var + eps) * s_ref[...]).astype(o_ref.dtype)


def rmsnorm(x2d, scale, eps=1e-5, out_dtype=jnp.bfloat16):
    M, C = x2d.shape
    tm = _pick_tile(M, 16, 256)
    s2d = scale.reshape(1, C).astype(jnp.float32)
    return pl.pallas_call(
        functools.partial(_rmsnorm_kernel, eps=eps),
        out_shape=jax.ShapeDtypeStruct((M, C), out_dtype),
        grid=(M // tm,),
        in_specs=[pl.BlockSpec((tm, C), lambda i: (i, 0)),
                  pl.BlockSpec((1, C), lambda i: (0, 0))],
        out_specs=pl.BlockSpec((tm, C), lambda i: (i, 0)),
        compiler_params=_compiler_params(("parallel",)),
    )(x2d, s2d)


# ---------------------------------------------------------------------------
# Flash attention (causal) with fused rotate-half RoPE + scale.
#   q, k, v: (B, H, T, hs) bf16; q/k channels are in rotate-half layout
#   (weight rows pre-permuted), cos2/sin2: (T, hs) fp32 (both halves equal).
# ---------------------------------------------------------------------------
def _flash_rope_kernel(q_ref, k_ref, v_ref, cq_ref, sq_ref, ck_ref, sk_ref,
                       o_ref, qs_ref, m_ref, l_ref, acc_ref, *, scale):
    qi = pl.program_id(2)
    ki = pl.program_id(3)
    hs = q_ref.shape[-1]
    h2 = hs // 2

    def rope(x, cos, sin):
        rot = jnp.concatenate([-x[:, h2:], x[:, :h2]], axis=-1)
        return x * cos + rot * sin

    @pl.when(ki == 0)
    def _():
        q = rope(q_ref[...].astype(jnp.float32), cq_ref[...], sq_ref[...])
        qs_ref[...] = (q * scale).astype(qs_ref.dtype)   # rope'd + pre-scaled q
        m_ref[...] = jnp.full_like(m_ref, -jnp.inf)
        l_ref[...] = jnp.zeros_like(l_ref)
        acc_ref[...] = jnp.zeros_like(acc_ref)

    def scores():
        kr = rope(k_ref[...].astype(jnp.float32), ck_ref[...], sk_ref[...])
        return lax.dot_general(qs_ref[...], kr.astype(k_ref.dtype),
                               dimension_numbers=(((1,), (1,)), ((), ())),
                               preferred_element_type=jnp.float32)

    def update(s):
        m_prev = m_ref[...]
        m_new = jnp.maximum(m_prev, jnp.max(s, axis=-1, keepdims=True))
        alpha = jnp.exp(m_prev - m_new)
        p = jnp.exp(s - m_new)
        l_ref[...] = alpha * l_ref[...] + jnp.sum(p, axis=-1, keepdims=True)
        acc_ref[...] = alpha * acc_ref[...] + jnp.dot(
            p.astype(v_ref.dtype), v_ref[...], preferred_element_type=jnp.float32)
        m_ref[...] = m_new

    # Interior blocks (fully below the diagonal): no mask work at all.
    @pl.when(ki < qi)
    def _():
        update(scores())

    # Diagonal block: local causal mask (tq == tkv).
    @pl.when(ki == qi)
    def _():
        s = scores()
        tq, tkv = s.shape
        r = lax.broadcasted_iota(jnp.int32, (tq, tkv), 0)
        c = lax.broadcasted_iota(jnp.int32, (tq, tkv), 1)
        update(jnp.where(c <= r, s, -jnp.inf))

    @pl.when(ki == pl.num_programs(3) - 1)
    def _():
        inv_l = pl.reciprocal(l_ref[...], approx=True)
        o_ref[...] = (acc_ref[...] * inv_l).astype(o_ref.dtype)


def flash_attention_rope(q, k, v, cos2, sin2):
    """Matches F.scaled_dot_product_attention(is_causal=True) after RoPE."""
    B, H, T, hs = q.shape
    scale = 1.0 / math.sqrt(hs)
    t = _pick_tile(T, 16, 512)          # tq == tkv
    nq = T // t

    kernel = functools.partial(_flash_rope_kernel, scale=scale)
    q_spec = pl.BlockSpec((None, None, t, hs), lambda b, h, qi, ki: (b, h, qi, 0))
    # Clamp kv blocks to the causal triangle so skipped-block DMAs are elided.
    kv_spec = pl.BlockSpec((None, None, t, hs),
                           lambda b, h, qi, ki: (b, h, jnp.minimum(qi, ki), 0))
    cq_spec = pl.BlockSpec((t, hs), lambda b, h, qi, ki: (qi, 0))
    ck_spec = pl.BlockSpec((t, hs), lambda b, h, qi, ki: (jnp.minimum(qi, ki), 0))

    return pl.pallas_call(
        kernel,
        out_shape=jax.ShapeDtypeStruct((B, H, T, hs), q.dtype),
        grid=(B, H, nq, nq),
        in_specs=[q_spec, kv_spec, kv_spec, cq_spec, cq_spec, ck_spec, ck_spec],
        out_specs=q_spec,
        scratch_shapes=[pltpu.VMEM((t, hs), q.dtype),       # rope'd, scaled q
                        pltpu.VMEM((t, 1), jnp.float32),    # m
                        pltpu.VMEM((t, 1), jnp.float32),    # l
                        pltpu.VMEM((t, hs), jnp.float32)],  # acc
        compiler_params=_compiler_params(
            ("parallel", "parallel", "parallel", "arbitrary")),
    )(q, k, v, cos2, sin2, cos2, sin2)


# ---------------------------------------------------------------------------
# RoPE caches
# ---------------------------------------------------------------------------
def build_rope_cache_rh(seq_len, n_elem, base=10000):
    """cos/sin duplicated over both halves -> rotate-half layout, (T, n_elem)."""
    theta = 1.0 / (base ** (jnp.arange(0, n_elem, 2, dtype=jnp.float32) / n_elem))
    idx_theta = jnp.outer(jnp.arange(seq_len, dtype=jnp.float32), theta)
    cos, sin = jnp.cos(idx_theta), jnp.sin(idx_theta)
    return (jnp.concatenate([cos, cos], -1), jnp.concatenate([sin, sin], -1))


def build_rope_cache_jax(seq_len, n_elem, base=10000):
    """Interleaved-pair cache (reference path), (T, n_elem//2) cos/sin."""
    theta = 1.0 / (base ** (jnp.arange(0, n_elem, 2, dtype=jnp.float32) / n_elem))
    idx_theta = jnp.outer(jnp.arange(seq_len, dtype=jnp.float32), theta)
    return jnp.cos(idx_theta), jnp.sin(idx_theta)


def apply_rope_jax(x, cos, sin):
    # x: (B, H, T, hs); cos, sin: (T, hs//2). Interleaved-pair rotation (ref).
    B, H, T, hs = x.shape
    xf = x.astype(jnp.float32).reshape(B, H, T, hs // 2, 2)
    x0, x1 = xf[..., 0], xf[..., 1]
    c = cos[None, None, :, :]
    s = sin[None, None, :, :]
    o0 = x0 * c - x1 * s
    o1 = x1 * c + x0 * s
    return jnp.stack([o0, o1], axis=-1).reshape(B, H, T, hs).astype(x.dtype)


# ---------------------------------------------------------------------------
# Model pieces (kernel path)
# ---------------------------------------------------------------------------
def causal_self_attention(x2d, p, *, B, T, n_head, cos2, sin2, residual2d):
    C = x2d.shape[-1]
    hs = C // n_head

    qkv = linear_no_bias(x2d, p["w_attn"])                # (B*T, 3C) bf16
    q, k, v = jnp.split(qkv.reshape(B, T, 3 * C), 3, axis=-1)

    def to_heads(t):
        return t.reshape(B, T, n_head, hs).transpose(0, 2, 1, 3)   # (B,H,T,hs)

    q, k, v = to_heads(q), to_heads(k), to_heads(v)
    y = flash_attention_rope(q, k, v, cos2, sin2)          # (B,H,T,hs) bf16
    y2d = y.transpose(0, 2, 1, 3).reshape(B * T, C)
    # residual add fused into the output projection
    return linear_no_bias(y2d, p["w_proj"], residual=residual2d,
                          out_dtype=jnp.float32)


def llama_block(x2d, p, *, B, T, n_head, cos2, sin2):
    h = rmsnorm(x2d, p["rms1"])                            # bf16
    x2d = causal_self_attention(h, p, B=B, T=T, n_head=n_head,
                                cos2=cos2, sin2=sin2, residual2d=x2d)
    h = rmsnorm(x2d, p["rms2"])                            # bf16
    up = gated_silu_up(h, p["w_fc1"], p["w_fc2"])          # bf16
    x2d = linear_no_bias(up, p["w_mlp_proj"], residual=x2d,
                         out_dtype=jnp.float32)
    return x2d


def llama_forward(params, idx, *, n_head, block_size):
    B, T = idx.shape
    # TODO(synk): token-embedding gather stays plain JAX (dynamic row gather).
    x = jnp.take(params["wte"], idx, axis=0)               # (B,T,C) fp32
    C = x.shape[-1]
    hs = C // n_head
    cos2, sin2 = build_rope_cache_rh(block_size, hs)
    cos2, sin2 = cos2[:T], sin2[:T]

    x2d = x.reshape(B * T, C)
    for p in params["blocks"]:
        x2d = llama_block(x2d, p, B=B, T=T, n_head=n_head, cos2=cos2, sin2=sin2)
    xn = rmsnorm(x2d, params["ln_f"])                      # bf16
    logits = linear_no_bias(xn, params["lm_head"], out_dtype=jnp.float32)
    return logits.reshape(B, T, -1)


# ---------------------------------------------------------------------------
# One-time parameter preprocessing for the kernel path:
#   * permute q/k rows of c_attn into rotate-half layout (per head)
#   * cast matmul weights to bf16
# ---------------------------------------------------------------------------
def _rotate_half_perm(n_head, hs):
    h2 = hs // 2
    idx = []
    for h in range(n_head):
        base = h * hs
        idx += [base + 2 * i for i in range(h2)]       # even channels -> first half
        idx += [base + 2 * i + 1 for i in range(h2)]   # odd channels  -> second half
    return jnp.asarray(idx, dtype=jnp.int32)


def preprocess_params(params, *, n_head):
    C = params["wte"].shape[1]
    hs = C // n_head
    perm = _rotate_half_perm(n_head, hs)

    def prep_block(p):
        wa = p["w_attn"]
        wq, wk, wv = wa[:C], wa[C:2 * C], wa[2 * C:]
        wa = jnp.concatenate([wq[perm], wk[perm], wv], axis=0)
        return {
            "rms1": p["rms1"],
            "rms2": p["rms2"],
            "w_attn": wa.astype(jnp.bfloat16),
            "w_proj": p["w_proj"].astype(jnp.bfloat16),
            "w_fc1": p["w_fc1"].astype(jnp.bfloat16),
            "w_fc2": p["w_fc2"].astype(jnp.bfloat16),
            "w_mlp_proj": p["w_mlp_proj"].astype(jnp.bfloat16),
        }

    return {
        "wte": params["wte"],
        "ln_f": params["ln_f"],
        "lm_head": params["lm_head"].astype(jnp.bfloat16),
        "blocks": [prep_block(p) for p in params["blocks"]],
    }


# ---------------------------------------------------------------------------
# Pure-JAX fp32 reference (original torch layout / interleaved RoPE)
# ---------------------------------------------------------------------------
def reference_forward(params, idx, *, n_head, block_size):
    x = jnp.take(params["wte"], idx, axis=0)
    B, T, C = x.shape
    hs = C // n_head
    cos, sin = build_rope_cache_jax(block_size, hs)

    def rms_ref(x, scale, eps=1e-5):
        var = jnp.mean(x * x, axis=-1, keepdims=True)
        return scale * (x * lax.rsqrt(var + eps))

    def attn_ref(x, w_attn, w_proj):
        qkv = x.reshape(B * T, C) @ w_attn.T
        q, k, v = jnp.split(qkv.reshape(B, T, 3 * C), 3, axis=-1)

        def to_heads(t):
            return t.reshape(B, T, n_head, hs).transpose(0, 2, 1, 3)

        q, k, v = to_heads(q), to_heads(k), to_heads(v)
        q = apply_rope_jax(q, cos[:T], sin[:T])
        k = apply_rope_jax(k, cos[:T], sin[:T])
        s = jnp.einsum("bhqd,bhkd->bhqk", q, k) / math.sqrt(hs)
        mask = jnp.tril(jnp.ones((T, T), dtype=bool))
        s = jnp.where(mask[None, None], s, -jnp.inf)
        p = jax.nn.softmax(s, axis=-1)
        y = jnp.einsum("bhqk,bhkd->bhqd", p, v)
        y = y.transpose(0, 2, 1, 3).reshape(B * T, C)
        return (y @ w_proj.T).reshape(B, T, C)

    def mlp_ref(x, w1, w2, wp):
        h = x.reshape(B * T, C)
        a = h @ w1.T
        g = (a * jax.nn.sigmoid(a)) * (h @ w2.T)
        return (g @ wp.T).reshape(B, T, C)

    for p in params["blocks"]:
        x = x + attn_ref(rms_ref(x, p["rms1"]), p["w_attn"], p["w_proj"])
        x = x + mlp_ref(rms_ref(x, p["rms2"]), p["w_fc1"], p["w_fc2"], p["w_mlp_proj"])
    x = rms_ref(x, params["ln_f"])
    return (x.reshape(B * T, C) @ params["lm_head"].T).reshape(B, T, -1)


# ---------------------------------------------------------------------------
# Parameter construction (matches lit_llama module shapes, fp32 originals)
# ---------------------------------------------------------------------------
def init_params(key, *, vocab_size, n_layer, n_head, n_embd):
    hidden_dim = 4 * n_embd
    n_hidden = int(2 * hidden_dim / 3)
    n_hidden = (n_hidden - 1) // 256 * 256 + 256
    keys = jax.random.split(key, 2 + 5 * n_layer)
    std = 0.02
    params = {
        "wte": std * jax.random.normal(keys[0], (vocab_size, n_embd), jnp.float32),
        "lm_head": std * jax.random.normal(keys[1], (vocab_size, n_embd), jnp.float32),
        "ln_f": jnp.ones((n_embd,), jnp.float32),
        "blocks": [],
    }
    it = 2
    for _ in range(n_layer):
        k1, k2, k3, k4, k5 = keys[it:it + 5]
        it += 5
        params["blocks"].append({
            "rms1": jnp.ones((n_embd,), jnp.float32),
            "w_attn": std * jax.random.normal(k1, (3 * n_embd, n_embd), jnp.float32),
            "w_proj": std * jax.random.normal(k2, (n_embd, n_embd), jnp.float32),
            "rms2": jnp.ones((n_embd,), jnp.float32),
            "w_fc1": std * jax.random.normal(k3, (n_hidden, n_embd), jnp.float32),
            "w_fc2": std * jax.random.normal(k4, (n_hidden, n_embd), jnp.float32),
            "w_mlp_proj": std * jax.random.normal(k5, (n_embd, n_hidden), jnp.float32),
        })
    return params


# ---------------------------------------------------------------------------

if __name__ == "__main__":
    # Small config consistent with the module: B=2, T=8, n_embd=32, n_head=4
    vocab_size, n_layer, n_head, n_embd, block_size = 64, 2, 4, 32, 16
    B, T = 2, 8

    key = jax.random.PRNGKey(0)
    kp, kidx = jax.random.split(key)
    params = init_params(kp, vocab_size=vocab_size, n_layer=n_layer,
                         n_head=n_head, n_embd=n_embd)
    idx = jax.random.randint(kidx, (B, T), 0, vocab_size, dtype=jnp.int32)

    # one-time kernel-ready params: bf16 weights + rotate-half q/k permutation
    kparams = preprocess_params(params, n_head=n_head)

    fwd = jax.jit(functools.partial(llama_forward, n_head=n_head,
                                    block_size=block_size))
    logits = fwd(kparams, idx)
    logits = jax.block_until_ready(logits)

    ref = reference_forward(params, idx, n_head=n_head, block_size=block_size)
    assert logits.shape == (B, T, vocab_size)
    assert bool(jnp.all(jnp.isfinite(logits)))
    max_err = float(jnp.max(jnp.abs(logits - ref)))
    # bf16 MXU operands + approx reciprocal -> looser tolerance than fp32
    assert jnp.allclose(logits, ref, atol=2.5e-2, rtol=2.5e-2), (
        f"mismatch vs reference (max |diff| = {max_err})")

    print("KERNEL_OK")
</pallas_src>

<mosaic_0001>
module attributes {stable_mosaic.version = 11 : i64} {
  func.func @_matmul_kernel(%arg0: i32, %arg1: i32, %arg2: i32, %arg3: memref<16x32xbf16, #tpu.memory_space<vmem>>, %arg4: memref<96x32xbf16, #tpu.memory_space<vmem>>, %arg5: memref<16x96xbf16, #tpu.memory_space<vmem>>, %arg6: memref<16x96xf32, #tpu.memory_space<vmem>>) attributes {dimension_semantics = [#tpu.dimension_semantics<parallel>, #tpu.dimension_semantics<parallel>, #tpu.dimension_semantics<arbitrary>], iteration_bounds = array<i64: 1, 1, 1>, scalar_prefetch = 0 : i64, scratch_operands = 1 : i64, tpu.core_type = #tpu.core_type<tc>, window_params = [{transform_indices = @transform_0, window_bounds = array<i64: 16, 32>}, {transform_indices = @transform_1, window_bounds = array<i64: 96, 32>}, {transform_indices = @transform_2, window_bounds = array<i64: 16, 96>}]} {
    %c0_i32 = arith.constant 0 : i32
    %0 = arith.cmpi eq, %arg2, %c0_i32 : i32
    %1 = arith.extui %0 : i1 to i32
    %c0_i32_0 = arith.constant 0 : i32
    %2 = arith.cmpi ne, %1, %c0_i32_0 : i32
    scf.if %2 {
      %cst_10 = arith.constant 0.000000e+00 : f32
      %12 = vector.broadcast %cst_10 : f32 to vector<16x96xf32>
      %c0_11 = arith.constant 0 : index
      %c0_12 = arith.constant 0 : index
      %13 = vector.load %arg6[%c0_11, %c0_12] : memref<16x96xf32, #tpu.memory_space<vmem>>, vector<16x96xf32>
      tpu.vector_store %arg6[%c0_11, %c0_12], %12 {strides = array<i32>} : memref<16x96xf32, #tpu.memory_space<vmem>>, vector<16x96xf32>,
    } else {
    }
    %c0 = arith.constant 0 : index
    %c0_1 = arith.constant 0 : index
    %3 = vector.load %arg6[%c0, %c0_1] : memref<16x96xf32, #tpu.memory_space<vmem>>, vector<16x96xf32>
    %c0_2 = arith.constant 0 : index
    %c0_3 = arith.constant 0 : index
    %4 = vector.load %arg3[%c0_2, %c0_3] : memref<16x32xbf16, #tpu.memory_space<vmem>>, vector<16x32xbf16>
    %c0_4 = arith.constant 0 : index
    %c0_5 = arith.constant 0 : index
    %5 = vector.load %arg4[%c0_4, %c0_5] : memref<96x32xbf16, #tpu.memory_space<vmem>>, vector<96x32xbf16>
    %cst = arith.constant dense<0.000000e+00> : vector<16x96xf32>
    %6 = tpu.matmul %4, %5, %cst {dimension_numbers = #tpu.dot_dimension_numbers<[1], [1], [0], [0], [0, 0, 1, 0], [], []>} : vector<16x32xbf16>, vector<96x32xbf16>, vector<16x96xf32> -> vector<16x96xf32>
    %7 = arith.addf %3, %6 : vector<16x96xf32>
    %c0_6 = arith.constant 0 : index
    %c0_7 = arith.constant 0 : index
    %8 = vector.load %arg6[%c0_6, %c0_7] : memref<16x96xf32, #tpu.memory_space<vmem>>, vector<16x96xf32>
    tpu.vector_store %arg6[%c0_6, %c0_7], %7 {strides = array<i32>} : memref<16x96xf32, #tpu.memory_space<vmem>>, vector<16x96xf32>,
    %c0_i32_8 = arith.constant 0 : i32
    %9 = arith.cmpi eq, %arg2, %c0_i32_8 : i32
    %10 = arith.extui %9 : i1 to i32
    %c0_i32_9 = arith.constant 0 : i32
    %11 = arith.cmpi ne, %10, %c0_i32_9 : i32
    scf.if %11 {
      %c0_10 = arith.constant 0 : index
      %c0_11 = arith.constant 0 : index
      %12 = vector.load %arg6[%c0_10, %c0_11] : memref<16x96xf32, #tpu.memory_space<vmem>>, vector<16x96xf32>
      %13 = arith.truncf %12 : vector<16x96xf32> to vector<16x96xbf16>
      %c0_12 = arith.constant 0 : index
      %c0_13 = arith.constant 0 : index
      %14 = vector.load %arg5[%c0_12, %c0_13] : memref<16x96xbf16, #tpu.memory_space<vmem>>, vector<16x96xbf16>
      tpu.vector_store %arg5[%c0_12, %c0_13], %13 {strides = array<i32>} : memref<16x96xbf16, #tpu.memory_space<vmem>>, vector<16x96xbf16>,
    } else {
    }
    return
  }
  func.func @transform_0(%arg0: i32, %arg1: i32, %arg2: i32) -> (i32, i32) {
    %c0_i32 = arith.constant 0 : i32
    return %arg0, %arg2 : i32, i32
  }
  func.func @transform_1(%arg0: i32, %arg1: i32, %arg2: i32) -> (i32, i32) {
    %c0_i32 = arith.constant 0 : i32
    return %arg1, %arg2 : i32, i32
  }
  func.func @transform_2(%arg0: i32, %arg1: i32, %arg2: i32) -> (i32, i32) {
    %c0_i32 = arith.constant 0 : i32
    return %arg0, %arg1 : i32, i32
  }
}

module attributes {stable_mosaic.version = 11 : i64} {
  func.func @_rmsnorm_kernel(%arg0: i32, %arg1: memref<16x32xf32, #tpu.memory_space<vmem>>, %arg2: memref<1x32xf32, #tpu.memory_space<vmem>>, %arg3: memref<16x32xbf16, #tpu.memory_space<vmem>>) attributes {dimension_semantics = [#tpu.dimension_semantics<parallel>], iteration_bounds = array<i64: 1>, scalar_prefetch = 0 : i64, scratch_operands = 0 : i64, tpu.core_type = #tpu.core_type<tc>, window_params = [{transform_indices = @transform_0, window_bounds = array<i64: 16, 32>}, {pipeline_mode = #tpu.pipeline_mode<synchronous>, transform_indices = @transform_1, window_bounds = array<i64: 1, 32>}, {transform_indices = @transform_2, window_bounds = array<i64: 16, 32>}]} {
    %c0 = arith.constant 0 : index
    %c0_0 = arith.constant 0 : index
    %0 = vector.load %arg1[%c0, %c0_0] : memref<16x32xf32, #tpu.memory_space<vmem>>, vector<16x32xf32>
    %1 = arith.mulf %0, %0 : vector<16x32xf32>
    %cst = arith.constant dense<0.000000e+00> : vector<16xf32>
    %2 = vector.multi_reduction <add>, %1, %cst [1] : vector<16x32xf32> to vector<16xf32>
    %3 = vector.shape_cast %2 : vector<16xf32> to vector<16x1xf32>
    %cst_1 = arith.constant 3.200000e+01 : f32
    %4 = vector.broadcast %cst_1 : f32 to vector<16x1xf32>
    %5 = arith.divf %3, %4 : vector<16x1xf32>
    %cst_2 = arith.constant 9.99999974E-6 : f32
    %6 = vector.broadcast %cst_2 : f32 to vector<16x1xf32>
    %7 = arith.addf %5, %6 : vector<16x1xf32>
    %8 = math.rsqrt %7 : vector<16x1xf32>
    %9 = vector.broadcast %8 : vector<16x1xf32> to vector<16x32xf32>
    %10 = arith.mulf %0, %9 : vector<16x32xf32>
    %c0_3 = arith.constant 0 : index
    %c0_4 = arith.constant 0 : index
    %11 = vector.load %arg2[%c0_3, %c0_4] : memref<1x32xf32, #tpu.memory_space<vmem>>, vector<1x32xf32>
    %12 = vector.broadcast %11 : vector<1x32xf32> to vector<16x32xf32>
    %13 = arith.mulf %10, %12 : vector<16x32xf32>
    %14 = arith.truncf %13 : vector<16x32xf32> to vector<16x32xbf16>
    %c0_5 = arith.constant 0 : index
    %c0_6 = arith.constant 0 : index
    %15 = vector.load %arg3[%c0_5, %c0_6] : memref<16x32xbf16, #tpu.memory_space<vmem>>, vector<16x32xbf16>
    tpu.vector_store %arg3[%c0_5, %c0_6], %14 {strides = array<i32>} : memref<16x32xbf16, #tpu.memory_space<vmem>>, vector<16x32xbf16>,
    return
  }
  func.func @transform_0(%arg0: i32) -> (i32, i32) {
    %c0_i32 = arith.constant 0 : i32
    %c0_i32_0 = arith.constant 0 : i32
    return %arg0, %c0_i32 : i32, i32
  }
  func.func @transform_1(%arg0: i32) -> (i32, i32) {
    %c0_i32 = arith.constant 0 : i32
    %c0_i32_0 = arith.constant 0 : i32
    %c0_i32_1 = arith.constant 0 : i32
    return %c0_i32, %c0_i32_0 : i32, i32
  }
  func.func @transform_2(%arg0: i32) -> (i32, i32) {
    %c0_i32 = arith.constant 0 : i32
    %c0_i32_0 = arith.constant 0 : i32
    return %arg0, %c0_i32 : i32, i32
  }
}

module attributes {stable_mosaic.version = 11 : i64} {
  func.func @_flash_rope_kernel(%arg0: i32, %arg1: i32, %arg2: i32, %arg3: i32, %arg4: memref<1x1x8x8xbf16, #tpu.memory_space<vmem>>, %arg5: memref<1x1x8x8xbf16, #tpu.memory_space<vmem>>, %arg6: memref<1x1x8x8xbf16, #tpu.memory_space<vmem>>, %arg7: memref<8x8xf32, #tpu.memory_space<vmem>>, %arg8: memref<8x8xf32, #tpu.memory_space<vmem>>, %arg9: memref<8x8xf32, #tpu.memory_space<vmem>>, %arg10: memref<8x8xf32, #tpu.memory_space<vmem>>, %arg11: memref<1x1x8x8xbf16, #tpu.memory_space<vmem>>, %arg12: memref<8x8xbf16, #tpu.memory_space<vmem>>, %arg13: memref<8x1xf32, #tpu.memory_space<vmem>>, %arg14: memref<8x1xf32, #tpu.memory_space<vmem>>, %arg15: memref<8x8xf32, #tpu.memory_space<vmem>>) attributes {dimension_semantics = [#tpu.dimension_semantics<parallel>, #tpu.dimension_semantics<parallel>, #tpu.dimension_semantics<parallel>, #tpu.dimension_semantics<arbitrary>], iteration_bounds = array<i64: 2, 4, 1, 1>, scalar_prefetch = 0 : i64, scratch_operands = 4 : i64, tpu.core_type = #tpu.core_type<tc>, window_params = [{transform_indices = @transform_0, window_bounds = array<i64: 1, 1, 8, 8>}, {transform_indices = @transform_1, window_bounds = array<i64: 1, 1, 8, 8>}, {transform_indices = @transform_2, window_bounds = array<i64: 1, 1, 8, 8>}, {transform_indices = @transform_3, window_bounds = array<i64: 8, 8>}, {transform_indices = @transform_4, window_bounds = array<i64: 8, 8>}, {transform_indices = @transform_5, window_bounds = array<i64: 8, 8>}, {transform_indices = @transform_6, window_bounds = array<i64: 8, 8>}, {transform_indices = @transform_7, window_bounds = array<i64: 1, 1, 8, 8>}]} {
    %c0_i32 = arith.constant 0 : i32
    %0 = arith.cmpi eq, %arg3, %c0_i32 : i32
    %1 = arith.extui %0 : i1 to i32
    %c0_i32_0 = arith.constant 0 : i32
    %2 = arith.cmpi ne, %1, %c0_i32_0 : i32
    scf.if %2 {
      %c0 = arith.constant 0 : index
      %c0_5 = arith.constant 0 : index
      %c0_6 = arith.constant 0 : index
      %c0_7 = arith.constant 0 : index
      %12 = vector.load %arg4[%c0, %c0_5, %c0_6, %c0_7] : memref<1x1x8x8xbf16, #tpu.memory_space<vmem>>, vector<1x1x8x8xbf16>
      %13 = vector.shape_cast %12 : vector<1x1x8x8xbf16> to vector<8x8xbf16>
      %14 = arith.extf %13 : vector<8x8xbf16> to vector<8x8xf32>
      %c0_8 = arith.constant 0 : index
      %c0_9 = arith.constant 0 : index
      %15 = vector.load %arg7[%c0_8, %c0_9] : memref<8x8xf32, #tpu.memory_space<vmem>>, vector<8x8xf32>
      %c0_10 = arith.constant 0 : index
      %c0_11 = arith.constant 0 : index
      %16 = vector.load %arg8[%c0_10, %c0_11] : memref<8x8xf32, #tpu.memory_space<vmem>>, vector<8x8xf32>
      %17 = vector.extract_strided_slice %14 {offsets = [0, 4], sizes = [8, 4], strides = [1, 1]} : vector<8x8xf32> to vector<8x4xf32>
      %cst = arith.constant 0.000000e+00 : f32
      %18 = vector.broadcast %cst : f32 to vector<8x4xf32>
      %19 = arith.subf %18, %17 : vector<8x4xf32>
      %20 = vector.extract_strided_slice %14 {offsets = [0, 0], sizes = [8, 4], strides = [1, 1]} : vector<8x8xf32> to vector<8x4xf32>
      %21 = tpu.concatenate %19, %20 in 1 : vector<8x4xf32>, vector<8x4xf32> -> vector<8x8xf32>
      %22 = arith.mulf %14, %15 : vector<8x8xf32>
      %23 = arith.mulf %21, %16 : vector<8x8xf32>
      %24 = arith.addf %22, %23 : vector<8x8xf32>
      %cst_12 = arith.constant 0.353553385 : f32
      %25 = vector.broadcast %cst_12 : f32 to vector<8x8xf32>
      %26 = arith.mulf %24, %25 : vector<8x8xf32>
      %27 = arith.truncf %26 : vector<8x8xf32> to vector<8x8xbf16>
      %c0_13 = arith.constant 0 : index
      %c0_14 = arith.constant 0 : index
      %28 = vector.load %arg12[%c0_13, %c0_14] : memref<8x8xbf16, #tpu.memory_space<vmem>>, vector<8x8xbf16>
      tpu.vector_store %arg12[%c0_13, %c0_14], %27 {strides = array<i32>} : memref<8x8xbf16, #tpu.memory_space<vmem>>, vector<8x8xbf16>,
      %cst_15 = arith.constant 0xFF800000 : f32
      %29 = vector.broadcast %cst_15 : f32 to vector<8x1xf32>
      %c0_16 = arith.constant 0 : index
      %c0_17 = arith.constant 0 : index
      %30 = vector.load %arg13[%c0_16, %c0_17] : memref<8x1xf32, #tpu.memory_space<vmem>>, vector<8x1xf32>
      tpu.vector_store %arg13[%c0_16, %c0_17], %29 {strides = array<i32>} : memref<8x1xf32, #tpu.memory_space<vmem>>, vector<8x1xf32>,
      %cst_18 = arith.constant 0.000000e+00 : f32
      %31 = vector.broadcast %cst_18 : f32 to vector<8x1xf32>
      %c0_19 = arith.constant 0 : index
      %c0_20 = arith.constant 0 : index
      %32 = vector.load %arg14[%c0_19, %c0_20] : memref<8x1xf32, #tpu.memory_space<vmem>>, vector<8x1xf32>
      tpu.vector_store %arg14[%c0_19, %c0_20], %31 {strides = array<i32>} : memref<8x1xf32, #tpu.memory_space<vmem>>, vector<8x1xf32>,
      %cst_21 = arith.constant 0.000000e+00 : f32
      %33 = vector.broadcast %cst_21 : f32 to vector<8x8xf32>
      %c0_22 = arith.constant 0 : index
      %c0_23 = arith.constant 0 : index
      %34 = vector.load %arg15[%c0_22, %c0_23] : memref<8x8xf32, #tpu.memory_space<vmem>>, vector<8x8xf32>
      tpu.vector_store %arg15[%c0_22, %c0_23], %33 {strides = array<i32>} : memref<8x8xf32, #tpu.memory_space<vmem>>, vector<8x8xf32>,
    } else {
    }
    %3 = arith.cmpi slt, %arg3, %arg2 : i32
    %4 = arith.extui %3 : i1 to i32
    %c0_i32_1 = arith.constant 0 : i32
    %5 = arith.cmpi ne, %4, %c0_i32_1 : i32
    scf.if %5 {
      %c0 = arith.constant 0 : index
      %c0_5 = arith.constant 0 : index
      %c0_6 = arith.constant 0 : index
      %c0_7 = arith.constant 0 : index
      %12 = vector.load %arg5[%c0, %c0_5, %c0_6, %c0_7] : memref<1x1x8x8xbf16, #tpu.memory_space<vmem>>, vector<1x1x8x8xbf16>
      %13 = vector.shape_cast %12 : vector<1x1x8x8xbf16> to vector<8x8xbf16>
      %14 = arith.extf %13 : vector<8x8xbf16> to vector<8x8xf32>
      %c0_8 = arith.constant 0 : index
      %c0_9 = arith.constant 0 : index
      %15 = vector.load %arg9[%c0_8, %c0_9] : memref<8x8xf32, #tpu.memory_space<vmem>>, vector<8x8xf32>
      %c0_10 = arith.constant 0 : index
      %c0_11 = arith.constant 0 : index
      %16 = vector.load %arg10[%c0_10, %c0_11] : memref<8x8xf32, #tpu.memory_space<vmem>>, vector<8x8xf32>
      %17 = vector.extract_strided_slice %14 {offsets = [0, 4], sizes = [8, 4], strides = [1, 1]} : vector<8x8xf32> to vector<8x4xf32>
      %cst = arith.constant 0.000000e+00 : f32
      %18 = vector.broadcast %cst : f32 to vector<8x4xf32>
      %19 = arith.subf %18, %17 : vector<8x4xf32>
      %20 = vector.extract_strided_slice %14 {offsets = [0, 0], sizes = [8, 4], strides = [1, 1]} : vector<8x8xf32> to vector<8x4xf32>
      %21 = tpu.concatenate %19, %20 in 1 : vector<8x4xf32>, vector<8x4xf32> -> vector<8x8xf32>
      %22 = arith.mulf %14, %15 : vector<8x8xf32>
      %23 = arith.mulf %21, %16 : vector<8x8xf32>
      %24 = arith.addf %22, %23 : vector<8x8xf32>
      %c0_12 = arith.constant 0 : index
      %c0_13 = arith.constant 0 : index
      %25 = vector.load %arg12[%c0_12, %c0_13] : memref<8x8xbf16, #tpu.memory_space<vmem>>, vector<8x8xbf16>
      %26 = arith.truncf %24 : vector<8x8xf32> to vector<8x8xbf16>
      %cst_14 = arith.constant dense<0.000000e+00> : vector<8x8xf32>
      %27 = tpu.matmul %25, %26, %cst_14 {dimension_numbers = #tpu.dot_dimension_numbers<[1], [1], [0], [0], [0, 0, 1, 0], [], []>} : vector<8x8xbf16>, vector<8x8xbf16>, vector<8x8xf32> -> vector<8x8xf32>
      %c0_15 = arith.constant 0 : index
      %c0_16 = arith.constant 0 : index
      %28 = vector.load %arg13[%c0_15, %c0_16] : memref<8x1xf32, #tpu.memory_space<vmem>>, vector<8x1xf32>
      %cst_17 = arith.constant dense<0xFF800000> : vector<8xf32>
      %29 = vector.multi_reduction <maximumf>, %27, %cst_17 [1] : vector<8x8xf32> to vector<8xf32>
      %30 = vector.shape_cast %29 : vector<8xf32> to vector<8x1xf32>
      %31 = arith.maximumf %28, %30 : vector<8x1xf32>
      %32 = arith.subf %28, %31 : vector<8x1xf32>
      %33 = math.exp %32 : vector<8x1xf32>
      %34 = vector.broadcast %31 : vector<8x1xf32> to vector<8x8xf32>
      %35 = arith.subf %27, %34 : vector<8x8xf32>
      %36 = math.exp %35 : vector<8x8xf32>
      %c0_18 = arith.constant 0 : index
      %c0_19 = arith.constant 0 : index
      %37 = vector.load %arg14[%c0_18, %c0_19] : memref<8x1xf32, #tpu.memory_space<vmem>>, vector<8x1xf32>
      %38 = arith.mulf %33, %37 : vector<8x1xf32>
      %cst_20 = arith.constant dense<0.000000e+00> : vector<8xf32>
      %39 = vector.multi_reduction <add>, %36, %cst_20 [1] : vector<8x8xf32> to vector<8xf32>
      %40 = vector.shape_cast %39 : vector<8xf32> to vector<8x1xf32>
      %41 = arith.addf %38, %40 : vector<8x1xf32>
      %c0_21 = arith.constant 0 : index
      %c0_22 = arith.constant 0 : index
      %42 = vector.load %arg14[%c0_21, %c0_22] : memref<8x1xf32, #tpu.memory_space<vmem>>, vector<8x1xf32>
      tpu.vector_store %arg14[%c0_21, %c0_22], %41 {strides = array<i32>} : memref<8x1xf32, #tpu.memory_space<vmem>>, vector<8x1xf32>,
      %c0_23 = arith.constant 0 : index
      %c0_24 = arith.constant 0 : index
      %43 = vector.load %arg15[%c0_23, %c0_24] : memref<8x8xf32, #tpu.memory_space<vmem>>, vector<8x8xf32>
      %44 = vector.broadcast %33 : vector<8x1xf32> to vector<8x8xf32>
      %45 = arith.mulf %44, %43 : vector<8x8xf32>
      %46 = arith.truncf %36 : vector<8x8xf32> to vector<8x8xbf16>
      %c0_25 = arith.constant 0 : index
      %c0_26 = arith.constant 0 : index
      %c0_27 = arith.constant 0 : index
      %c0_28 = arith.constant 0 : index
      %47 = vector.load %arg6[%c0_25, %c0_26, %c0_27, %c0_28] : memref<1x1x8x8xbf16, #tpu.memory_space<vmem>>, vector<1x1x8x8xbf16>
      %48 = vector.shape_cast %47 : vector<1x1x8x8xbf16> to vector<8x8xbf16>
      %cst_29 = arith.constant dense<0.000000e+00> : vector<8x8xf32>
      %49 = tpu.matmul %46, %48, %cst_29 {dimension_numbers = #tpu.dot_dimension_numbers<[1], [0], [0], [1], [0, 0, 1, 1], [], []>} : vector<8x8xbf16>, vector<8x8xbf16>, vector<8x8xf32> -> vector<8x8xf32>
      %50 = arith.addf %45, %49 : vector<8x8xf32>
      %c0_30 = arith.constant 0 : index
      %c0_31 = arith.constant 0 : index
      %51 = vector.load %arg15[%c0_30, %c0_31] : memref<8x8xf32, #tpu.memory_space<vmem>>, vector<8x8xf32>
      tpu.vector_store %arg15[%c0_30, %c0_31], %50 {strides = array<i32>} : memref<8x8xf32, #tpu.memory_space<vmem>>, vector<8x8xf32>,
      %c0_32 = arith.constant 0 : index
      %c0_33 = arith.constant 0 : index
      %52 = vector.load %arg13[%c0_32, %c0_33] : memref<8x1xf32, #tpu.memory_space<vmem>>, vector<8x1xf32>
      tpu.vector_store %arg13[%c0_32, %c0_33], %31 {strides = array<i32>} : memref<8x1xf32, #tpu.memory_space<vmem>>, vector<8x1xf32>,
    } else {
    }
    %6 = arith.cmpi eq, %arg3, %arg2 : i32
    %7 = arith.extui %6 : i1 to i32
    %c0_i32_2 = arith.constant 0 : i32
    %8 = arith.cmpi ne, %7, %c0_i32_2 : i32
    scf.if %8 {
      %c0 = arith.constant 0 : index
      %c0_5 = arith.constant 0 : index
      %c0_6 = arith.constant 0 : index
      %c0_7 = arith.constant 0 : index
      %12 = vector.load %arg5[%c0, %c0_5, %c0_6, %c0_7] : memref<1x1x8x8xbf16, #tpu.memory_space<vmem>>, vector<1x1x8x8xbf16>
      %13 = vector.shape_cast %12 : vector<1x1x8x8xbf16> to vector<8x8xbf16>
      %14 = arith.extf %13 : vector<8x8xbf16> to vector<8x8xf32>
      %c0_8 = arith.constant 0 : index
      %c0_9 = arith.constant 0 : index
      %15 = vector.load %arg9[%c0_8, %c0_9] : memref<8x8xf32, #tpu.memory_space<vmem>>, vector<8x8xf32>
      %c0_10 = arith.constant 0 : index
      %c0_11 = arith.constant 0 : index
      %16 = vector.load %arg10[%c0_10, %c0_11] : memref<8x8xf32, #tpu.memory_space<vmem>>, vector<8x8xf32>
      %17 = vector.extract_strided_slice %14 {offsets = [0, 4], sizes = [8, 4], strides = [1, 1]} : vector<8x8xf32> to vector<8x4xf32>
      %cst = arith.constant 0.000000e+00 : f32
      %18 = vector.broadcast %cst : f32 to vector<8x4xf32>
      %19 = arith.subf %18, %17 : vector<8x4xf32>
      %20 = vector.extract_strided_slice %14 {offsets = [0, 0], sizes = [8, 4], strides = [1, 1]} : vector<8x8xf32> to vector<8x4xf32>
      %21 = tpu.concatenate %19, %20 in 1 : vector<8x4xf32>, vector<8x4xf32> -> vector<8x8xf32>
      %22 = arith.mulf %14, %15 : vector<8x8xf32>
      %23 = arith.mulf %21, %16 : vector<8x8xf32>
      %24 = arith.addf %22, %23 : vector<8x8xf32>
      %c0_12 = arith.constant 0 : index
      %c0_13 = arith.constant 0 : index
      %25 = vector.load %arg12[%c0_12, %c0_13] : memref<8x8xbf16, #tpu.memory_space<vmem>>, vector<8x8xbf16>
      %26 = arith.truncf %24 : vector<8x8xf32> to vector<8x8xbf16>
      %cst_14 = arith.constant dense<0.000000e+00> : vector<8x8xf32>
      %27 = tpu.matmul %25, %26, %cst_14 {dimension_numbers = #tpu.dot_dimension_numbers<[1], [1], [0], [0], [0, 0, 1, 0], [], []>} : vector<8x8xbf16>, vector<8x8xbf16>, vector<8x8xf32> -> vector<8x8xf32>
      %28 = tpu.iota {dimensions = array<i32: 0>} : vector<8x8xi32>
      %29 = tpu.iota {dimensions = array<i32: 1>} : vector<8x8xi32>
      %30 = arith.cmpi sle, %29, %28 : vector<8x8xi32>
      %cst_15 = arith.constant 0xFF800000 : f32
      %31 = vector.broadcast %cst_15 : f32 to vector<8x8xf32>
      %32 = arith.select %30, %27, %31 : vector<8x8xi1>, vector<8x8xf32>
      %c0_16 = arith.constant 0 : index
      %c0_17 = arith.constant 0 : index
      %33 = vector.load %arg13[%c0_16, %c0_17] : memref<8x1xf32, #tpu.memory_space<vmem>>, vector<8x1xf32>
      %cst_18 = arith.constant dense<0xFF800000> : vector<8xf32>
      %34 = vector.multi_reduction <maximumf>, %32, %cst_18 [1] : vector<8x8xf32> to vector<8xf32>
      %35 = vector.shape_cast %34 : vector<8xf32> to vector<8x1xf32>
      %36 = arith.maximumf %33, %35 : vector<8x1xf32>
      %37 = arith.subf %33, %36 : vector<8x1xf32>
      %38 = math.exp %37 : vector<8x1xf32>
      %39 = vector.broadcast %36 : vector<8x1xf32> to vector<8x8xf32>
      %40 = arith.subf %32, %39 : vector<8x8xf32>
      %41 = math.exp %40 : vector<8x8xf32>
      %c0_19 = arith.constant 0 : index
      %c0_20 = arith.constant 0 : index
      %42 = vector.load %arg14[%c0_19, %c0_20] : memref<8x1xf32, #tpu.memory_space<vmem>>, vector<8x1xf32>
      %43 = arith.mulf %38, %42 : vector<8x1xf32>
      %cst_21 = arith.constant dense<0.000000e+00> : vector<8xf32>
      %44 = vector.multi_reduction <add>, %41, %cst_21 [1] : vector<8x8xf32> to vector<8xf32>
      %45 = vector.shape_cast %44 : vector<8xf32> to vector<8x1xf32>
      %46 = arith.addf %43, %45 : vector<8x1xf32>
      %c0_22 = arith.constant 0 : index
      %c0_23 = arith.constant 0 : index
      %47 = vector.load %arg14[%c0_22, %c0_23] : memref<8x1xf32, #tpu.memory_space<vmem>>, vector<8x1xf32>
      tpu.vector_store %arg14[%c0_22, %c0_23], %46 {strides = array<i32>} : memref<8x1xf32, #tpu.memory_space<vmem>>, vector<8x1xf32>,
      %c0_24 = arith.constant 0 : index
      %c0_25 = arith.constant 0 : index
      %48 = vector.load %arg15[%c0_24, %c0_25] : memref<8x8xf32, #tpu.memory_space<vmem>>, vector<8x8xf32>
      %49 = vector.broadcast %38 : vector<8x1xf32> to vector<8x8xf32>
      %50 = arith.mulf %49, %48 : vector<8x8xf32>
      %51 = arith.truncf %41 : vector<8x8xf32> to vector<8x8xbf16>
      %c0_26 = arith.constant 0 : index
      %c0_27 = arith.constant 0 : index
      %c0_28 = arith.constant 0 : index
      %c0_29 = arith.constant 0 : index
      %52 = vector.load %arg6[%c0_26, %c0_27, %c0_28, %c0_29] : memref<1x1x8x8xbf16, #tpu.memory_space<vmem>>, vector<1x1x8x8xbf16>
      %53 = vector.shape_cast %52 : vector<1x1x8x8xbf16> to vector<8x8xbf16>
      %cst_30 = arith.constant dense<0.000000e+00> : vector<8x8xf32>
      %54 = tpu.matmul %51, %53, %cst_30 {dimension_numbers = #tpu.dot_dimension_numbers<[1], [0], [0], [1], [0, 0, 1, 1], [], []>} : vector<8x8xbf16>, vector<8x8xbf16>, vector<8x8xf32> -> vector<8x8xf32>
      %55 = arith.addf %50, %54 : vector<8x8xf32>
      %c0_31 = arith.constant 0 : index
      %c0_32 = arith.constant 0 : index
      %56 = vector.load %arg15[%c0_31, %c0_32] : memref<8x8xf32, #tpu.memory_space<vmem>>, vector<8x8xf32>
      tpu.vector_store %arg15[%c0_31, %c0_32], %55 {strides = array<i32>} : memref<8x8xf32, #tpu.memory_space<vmem>>, vector<8x8xf32>,
      %c0_33 = arith.constant 0 : index
      %c0_34 = arith.constant 0 : index
      %57 = vector.load %arg13[%c0_33, %c0_34] : memref<8x1xf32, #tpu.memory_space<vmem>>, vector<8x1xf32>
      tpu.vector_store %arg13[%c0_33, %c0_34], %36 {strides = array<i32>} : memref<8x1xf32, #tpu.memory_space<vmem>>, vector<8x1xf32>,
    } else {
    }
    %c0_i32_3 = arith.constant 0 : i32
    %9 = arith.cmpi eq, %arg3, %c0_i32_3 : i32
    %10 = arith.extui %9 : i1 to i32
    %c0_i32_4 = arith.constant 0 : i32
    %11 = arith.cmpi ne, %10, %c0_i32_4 : i32
    scf.if %11 {
      %c0 = arith.constant 0 : index
      %c0_5 = arith.constant 0 : index
      %12 = vector.load %arg14[%c0, %c0_5] : memref<8x1xf32, #tpu.memory_space<vmem>>, vector<8x1xf32>
      %13 = tpu.reciprocal %12 {approx = true} : vector<8x1xf32> -> vector<8x1xf32>
      %c0_6 = arith.constant 0 : index
      %c0_7 = arith.constant 0 : index
      %14 = vector.load %arg15[%c0_6, %c0_7] : memref<8x8xf32, #tpu.memory_space<vmem>>, vector<8x8xf32>
      %15 = vector.broadcast %13 : vector<8x1xf32> to vector<8x8xf32>
      %16 = arith.mulf %14, %15 : vector<8x8xf32>
      %17 = arith.truncf %16 : vector<8x8xf32> to vector<8x8xbf16>
      %c0_8 = arith.constant 0 : index
      %c0_9 = arith.constant 0 : index
      %c0_10 = arith.constant 0 : index
      %c0_11 = arith.constant 0 : index
      %18 = vector.load %arg11[%c0_8, %c0_9, %c0_10, %c0_11] : memref<1x1x8x8xbf16, #tpu.memory_space<vmem>>, vector<1x1x8x8xbf16>
      %19 = vector.shape_cast %18 : vector<1x1x8x8xbf16> to vector<8x8xbf16>
      %20 = vector.shape_cast %17 : vector<8x8xbf16> to vector<1x1x8x8xbf16>
      tpu.vector_store %arg11[%c0_8, %c0_9, %c0_10, %c0_11], %20 {strides = array<i32>} : memref<1x1x8x8xbf16, #tpu.memory_space<vmem>>, vector<1x1x8x8xbf16>,
    } else {
    }
    return
  }
  func.func @transform_0(%arg0: i32, %arg1: i32, %arg2: i32, %arg3: i32) -> (i32, i32, i32, i32) {
    %c0_i32 = arith.constant 0 : i32
    %c0_i32_0 = arith.constant 0 : i32
    return %arg0, %arg1, %arg2, %c0_i32 : i32, i32, i32, i32
  }
  func.func @transform_1(%arg0: i32, %arg1: i32, %arg2: i32, %arg3: i32) -> (i32, i32, i32, i32) {
    %0 = arith.minsi %arg2, %arg3 : i32
    %c0_i32 = arith.constant 0 : i32
    %c0_i32_0 = arith.constant 0 : i32
    return %arg0, %arg1, %0, %c0_i32 : i32, i32, i32, i32
  }
  func.func @transform_2(%arg0: i32, %arg1: i32, %arg2: i32, %arg3: i32) -> (i32, i32, i32, i32) {
    %0 = arith.minsi %arg2, %arg3 : i32
    %c0_i32 = arith.constant 0 : i32
    %c0_i32_0 = arith.constant 0 : i32
    return %arg0, %arg1, %0, %c0_i32 : i32, i32, i32, i32
  }
  func.func @transform_3(%arg0: i32, %arg1: i32, %arg2: i32, %arg3: i32) -> (i32, i32) {
    %c0_i32 = arith.constant 0 : i32
    %c0_i32_0 = arith.constant 0 : i32
    return %arg2, %c0_i32 : i32, i32
  }
  func.func @transform_4(%arg0: i32, %arg1: i32, %arg2: i32, %arg3: i32) -> (i32, i32) {
    %c0_i32 = arith.constant 0 : i32
    %c0_i32_0 = arith.constant 0 : i32
    return %arg2, %c0_i32 : i32, i32
  }
  func.func @transform_5(%arg0: i32, %arg1: i32, %arg2: i32, %arg3: i32) -> (i32, i32) {
    %0 = arith.minsi %arg2, %arg3 : i32
    %c0_i32 = arith.constant 0 : i32
    %c0_i32_0 = arith.constant 0 : i32
    return %0, %c0_i32 : i32, i32
  }
  func.func @transform_6(%arg0: i32, %arg1: i32, %arg2: i32, %arg3: i32) -> (i32, i32) {
    %0 = arith.minsi %arg2, %arg3 : i32
    %c0_i32 = arith.constant 0 : i32
    %c0_i32_0 = arith.constant 0 : i32
    return %0, %c0_i32 : i32, i32
  }
  func.func @transform_7(%arg0: i32, %arg1: i32, %arg2: i32, %arg3: i32) -> (i32, i32, i32, i32) {
    %c0_i32 = arith.constant 0 : i32
    %c0_i32_0 = arith.constant 0 : i32
    return %arg0, %arg1, %arg2, %c0_i32 : i32, i32, i32, i32
  }
}

module attributes {stable_mosaic.version = 11 : i64} {
  func.func @_matmul_res_kernel(%arg0: i32, %arg1: i32, %arg2: i32, %arg3: memref<16x32xbf16, #tpu.memory_space<vmem>>, %arg4: memref<32x32xbf16, #tpu.memory_space<vmem>>, %arg5: memref<16x32xf32, #tpu.memory_space<vmem>>, %arg6: memref<16x32xf32, #tpu.memory_space<vmem>>, %arg7: memref<16x32xf32, #tpu.memory_space<vmem>>) attributes {dimension_semantics = [#tpu.dimension_semantics<parallel>, #tpu.dimension_semantics<parallel>, #tpu.dimension_semantics<arbitrary>], iteration_bounds = array<i64: 1, 1, 1>, scalar_prefetch = 0 : i64, scratch_operands = 1 : i64, tpu.core_type = #tpu.core_type<tc>, window_params = [{transform_indices = @transform_0, window_bounds = array<i64: 16, 32>}, {transform_indices = @transform_1, window_bounds = array<i64: 32, 32>}, {transform_indices = @transform_2, window_bounds = array<i64: 16, 32>}, {transform_indices = @transform_3, window_bounds = array<i64: 16, 32>}]} {
    %c0_i32 = arith.constant 0 : i32
    %0 = arith.cmpi eq, %arg2, %c0_i32 : i32
    %1 = arith.extui %0 : i1 to i32
    %c0_i32_0 = arith.constant 0 : i32
    %2 = arith.cmpi ne, %1, %c0_i32_0 : i32
    scf.if %2 {
      %cst_10 = arith.constant 0.000000e+00 : f32
      %12 = vector.broadcast %cst_10 : f32 to vector<16x32xf32>
      %c0_11 = arith.constant 0 : index
      %c0_12 = arith.constant 0 : index
      %13 = vector.load %arg7[%c0_11, %c0_12] : memref<16x32xf32, #tpu.memory_space<vmem>>, vector<16x32xf32>
      tpu.vector_store %arg7[%c0_11, %c0_12], %12 {strides = array<i32>} : memref<16x32xf32, #tpu.memory_space<vmem>>, vector<16x32xf32>,
    } else {
    }
    %c0 = arith.constant 0 : index
    %c0_1 = arith.constant 0 : index
    %3 = vector.load %arg7[%c0, %c0_1] : memref<16x32xf32, #tpu.memory_space<vmem>>, vector<16x32xf32>
    %c0_2 = arith.constant 0 : index
    %c0_3 = arith.constant 0 : index
    %4 = vector.load %arg3[%c0_2, %c0_3] : memref<16x32xbf16, #tpu.memory_space<vmem>>, vector<16x32xbf16>
    %c0_4 = arith.constant 0 : index
    %c0_5 = arith.constant 0 : index
    %5 = vector.load %arg4[%c0_4, %c0_5] : memref<32x32xbf16, #tpu.memory_space<vmem>>, vector<32x32xbf16>
    %cst = arith.constant dense<0.000000e+00> : vector<16x32xf32>
    %6 = tpu.matmul %4, %5, %cst {dimension_numbers = #tpu.dot_dimension_numbers<[1], [1], [0], [0], [0, 0, 1, 0], [], []>} : vector<16x32xbf16>, vector<32x32xbf16>, vector<16x32xf32> -> vector<16x32xf32>
    %7 = arith.addf %3, %6 : vector<16x32xf32>
    %c0_6 = arith.constant 0 : index
    %c0_7 = arith.constant 0 : index
    %8 = vector.load %arg7[%c0_6, %c0_7] : memref<16x32xf32, #tpu.memory_space<vmem>>, vector<16x32xf32>
    tpu.vector_store %arg7[%c0_6, %c0_7], %7 {strides = array<i32>} : memref<16x32xf32, #tpu.memory_space<vmem>>, vector<16x32xf32>,
    %c0_i32_8 = arith.constant 0 : i32
    %9 = arith.cmpi eq, %arg2, %c0_i32_8 : i32
    %10 = arith.extui %9 : i1 to i32
    %c0_i32_9 = arith.constant 0 : i32
    %11 = arith.cmpi ne, %10, %c0_i32_9 : i32
    scf.if %11 {
      %c0_10 = arith.constant 0 : index
      %c0_11 = arith.constant 0 : index
      %12 = vector.load %arg7[%c0_10, %c0_11] : memref<16x32xf32, #tpu.memory_space<vmem>>, vector<16x32xf32>
      %c0_12 = arith.constant 0 : index
      %c0_13 = arith.constant 0 : index
      %13 = vector.load %arg5[%c0_12, %c0_13] : memref<16x32xf32, #tpu.memory_space<vmem>>, vector<16x32xf32>
      %14 = arith.addf %12, %13 : vector<16x32xf32>
      %c0_14 = arith.constant 0 : index
      %c0_15 = arith.constant 0 : index
      %15 = vector.load %arg6[%c0_14, %c0_15] : memref<16x32xf32, #tpu.memory_space<vmem>>, vector<16x32xf32>
      tpu.vector_store %arg6[%c0_14, %c0_15], %14 {strides = array<i32>} : memref<16x32xf32, #tpu.memory_space<vmem>>, vector<16x32xf32>,
    } else {
    }
    return
  }
  func.func @transform_0(%arg0: i32, %arg1: i32, %arg2: i32) -> (i32, i32) {
    %c0_i32 = arith.constant 0 : i32
    return %arg0, %arg2 : i32, i32
  }
  func.func @transform_1(%arg0: i32, %arg1: i32, %arg2: i32) -> (i32, i32) {
    %c0_i32 = arith.constant 0 : i32
    return %arg1, %arg2 : i32, i32
  }
  func.func @transform_2(%arg0: i32, %arg1: i32, %arg2: i32) -> (i32, i32) {
    %c0_i32 = arith.constant 0 : i32
    return %arg0, %arg1 : i32, i32
  }
  func.func @transform_3(%arg0: i32, %arg1: i32, %arg2: i32) -> (i32, i32) {
    %c0_i32 = arith.constant 0 : i32
    return %arg0, %arg1 : i32, i32
  }
}

module attributes {stable_mosaic.version = 11 : i64} {
  func.func @_gated_mlp_kernel(%arg0: i32, %arg1: i32, %arg2: i32, %arg3: memref<16x32xbf16, #tpu.memory_space<vmem>>, %arg4: memref<256x32xbf16, #tpu.memory_space<vmem>>, %arg5: memref<256x32xbf16, #tpu.memory_space<vmem>>, %arg6: memref<16x256xbf16, #tpu.memory_space<vmem>>, %arg7: memref<16x256xf32, #tpu.memory_space<vmem>>, %arg8: memref<16x256xf32, #tpu.memory_space<vmem>>) attributes {dimension_semantics = [#tpu.dimension_semantics<parallel>, #tpu.dimension_semantics<parallel>, #tpu.dimension_semantics<arbitrary>], iteration_bounds = array<i64: 1, 1, 1>, scalar_prefetch = 0 : i64, scratch_operands = 2 : i64, tpu.core_type = #tpu.core_type<tc>, window_params = [{transform_indices = @transform_0, window_bounds = array<i64: 16, 32>}, {transform_indices = @transform_1, window_bounds = array<i64: 256, 32>}, {transform_indices = @transform_2, window_bounds = array<i64: 256, 32>}, {transform_indices = @transform_3, window_bounds = array<i64: 16, 256>}]} {
    %c0_i32 = arith.constant 0 : i32
    %0 = arith.cmpi eq, %arg2, %c0_i32 : i32
    %1 = arith.extui %0 : i1 to i32
    %c0_i32_0 = arith.constant 0 : i32
    %2 = arith.cmpi ne, %1, %c0_i32_0 : i32
    scf.if %2 {
      %cst_19 = arith.constant 0.000000e+00 : f32
      %18 = vector.broadcast %cst_19 : f32 to vector<16x256xf32>
      %c0_20 = arith.constant 0 : index
      %c0_21 = arith.constant 0 : index
      %19 = vector.load %arg7[%c0_20, %c0_21] : memref<16x256xf32, #tpu.memory_space<vmem>>, vector<16x256xf32>
      tpu.vector_store %arg7[%c0_20, %c0_21], %18 {strides = array<i32>} : memref<16x256xf32, #tpu.memory_space<vmem>>, vector<16x256xf32>,
      %cst_22 = arith.constant 0.000000e+00 : f32
      %20 = vector.broadcast %cst_22 : f32 to vector<16x256xf32>
      %c0_23 = arith.constant 0 : index
      %c0_24 = arith.constant 0 : index
      %21 = vector.load %arg8[%c0_23, %c0_24] : memref<16x256xf32, #tpu.memory_space<vmem>>, vector<16x256xf32>
      tpu.vector_store %arg8[%c0_23, %c0_24], %20 {strides = array<i32>} : memref<16x256xf32, #tpu.memory_space<vmem>>, vector<16x256xf32>,
    } else {
    }
    %c0 = arith.constant 0 : index
    %c0_1 = arith.constant 0 : index
    %3 = vector.load %arg7[%c0, %c0_1] : memref<16x256xf32, #tpu.memory_space<vmem>>, vector<16x256xf32>
    %c0_2 = arith.constant 0 : index
    %c0_3 = arith.constant 0 : index
    %4 = vector.load %arg3[%c0_2, %c0_3] : memref<16x32xbf16, #tpu.memory_space<vmem>>, vector<16x32xbf16>
    %c0_4 = arith.constant 0 : index
    %c0_5 = arith.constant 0 : index
    %5 = vector.load %arg4[%c0_4, %c0_5] : memref<256x32xbf16, #tpu.memory_space<vmem>>, vector<256x32xbf16>
    %cst = arith.constant dense<0.000000e+00> : vector<16x256xf32>
    %6 = tpu.matmul %4, %5, %cst {dimension_numbers = #tpu.dot_dimension_numbers<[1], [1], [0], [0], [0, 0, 1, 0], [], []>} : vector<16x32xbf16>, vector<256x32xbf16>, vector<16x256xf32> -> vector<16x256xf32>
    %7 = arith.addf %3, %6 : vector<16x256xf32>
    %c0_6 = arith.constant 0 : index
    %c0_7 = arith.constant 0 : index
    %8 = vector.load %arg7[%c0_6, %c0_7] : memref<16x256xf32, #tpu.memory_space<vmem>>, vector<16x256xf32>
    tpu.vector_store %arg7[%c0_6, %c0_7], %7 {strides = array<i32>} : memref<16x256xf32, #tpu.memory_space<vmem>>, vector<16x256xf32>,
    %c0_8 = arith.constant 0 : index
    %c0_9 = arith.constant 0 : index
    %9 = vector.load %arg8[%c0_8, %c0_9] : memref<16x256xf32, #tpu.memory_space<vmem>>, vector<16x256xf32>
    %c0_10 = arith.constant 0 : index
    %c0_11 = arith.constant 0 : index
    %10 = vector.load %arg3[%c0_10, %c0_11] : memref<16x32xbf16, #tpu.memory_space<vmem>>, vector<16x32xbf16>
    %c0_12 = arith.constant 0 : index
    %c0_13 = arith.constant 0 : index
    %11 = vector.load %arg5[%c0_12, %c0_13] : memref<256x32xbf16, #tpu.memory_space<vmem>>, vector<256x32xbf16>
    %cst_14 = arith.constant dense<0.000000e+00> : vector<16x256xf32>
    %12 = tpu.matmul %10, %11, %cst_14 {dimension_numbers = #tpu.dot_dimension_numbers<[1], [1], [0], [0], [0, 0, 1, 0], [], []>} : vector<16x32xbf16>, vector<256x32xbf16>, vector<16x256xf32> -> vector<16x256xf32>
    %13 = arith.addf %9, %12 : vector<16x256xf32>
    %c0_15 = arith.constant 0 : index
    %c0_16 = arith.constant 0 : index
    %14 = vector.load %arg8[%c0_15, %c0_16] : memref<16x256xf32, #tpu.memory_space<vmem>>, vector<16x256xf32>
    tpu.vector_store %arg8[%c0_15, %c0_16], %13 {strides = array<i32>} : memref<16x256xf32, #tpu.memory_space<vmem>>, vector<16x256xf32>,
    %c0_i32_17 = arith.constant 0 : i32
    %15 = arith.cmpi eq, %arg2, %c0_i32_17 : i32
    %16 = arith.extui %15 : i1 to i32
    %c0_i32_18 = arith.constant 0 : i32
    %17 = arith.cmpi ne, %16, %c0_i32_18 : i32
    scf.if %17 {
      %c0_19 = arith.constant 0 : index
      %c0_20 = arith.constant 0 : index
      %18 = vector.load %arg7[%c0_19, %c0_20] : memref<16x256xf32, #tpu.memory_space<vmem>>, vector<16x256xf32>
      %19 = arith.negf %18 : vector<16x256xf32>
      %20 = math.exp %19 : vector<16x256xf32>
      %cst_21 = arith.constant 1.000000e+00 : f32
      %21 = vector.broadcast %cst_21 : f32 to vector<16x256xf32>
      %22 = arith.addf %21, %20 : vector<16x256xf32>
      %23 = arith.divf %21, %22 : vector<16x256xf32>
      %24 = arith.mulf %18, %23 : vector<16x256xf32>
      %c0_22 = arith.constant 0 : index
      %c0_23 = arith.constant 0 : index
      %25 = vector.load %arg8[%c0_22, %c0_23] : memref<16x256xf32, #tpu.memory_space<vmem>>, vector<16x256xf32>
      %26 = arith.mulf %24, %25 : vector<16x256xf32>
      %27 = arith.truncf %26 : vector<16x256xf32> to vector<16x256xbf16>
      %c0_24 = arith.constant 0 : index
      %c0_25 = arith.constant 0 : index
      %28 = vector.load %arg6[%c0_24, %c0_25] : memref<16x256xbf16, #tpu.memory_space<vmem>>, vector<16x256xbf16>
      tpu.vector_store %arg6[%c0_24, %c0_25], %27 {strides = array<i32>} : memref<16x256xbf16, #tpu.memory_space<vmem>>, vector<16x256xbf16>,
    } else {
    }
    return
  }
  func.func @transform_0(%arg0: i32, %arg1: i32, %arg2: i32) -> (i32, i32) {
    %c0_i32 = arith.constant 0 : i32
    return %arg0, %arg2 : i32, i32
  }
  func.func @transform_1(%arg0: i32, %arg1: i32, %arg2: i32) -> (i32, i32) {
    %c0_i32 = arith.constant 0 : i32
    return %arg1, %arg2 : i32, i32
  }
  func.func @transform_2(%arg0: i32, %arg1: i32, %arg2: i32) -> (i32, i32) {
    %c0_i32 = arith.constant 0 : i32
    return %arg1, %arg2 : i32, i32
  }
  func.func @transform_3(%arg0: i32, %arg1: i32, %arg2: i32) -> (i32, i32) {
    %c0_i32 = arith.constant 0 : i32
    return %arg0, %arg1 : i32, i32
  }
}

module attributes {stable_mosaic.version = 11 : i64} {
  func.func @_matmul_res_kernel(%arg0: i32, %arg1: i32, %arg2: i32, %arg3: memref<16x256xbf16, #tpu.memory_space<vmem>>, %arg4: memref<32x256xbf16, #tpu.memory_space<vmem>>, %arg5: memref<16x32xf32, #tpu.memory_space<vmem>>, %arg6: memref<16x32xf32, #tpu.memory_space<vmem>>, %arg7: memref<16x32xf32, #tpu.memory_space<vmem>>) attributes {dimension_semantics = [#tpu.dimension_semantics<parallel>, #tpu.dimension_semantics<parallel>, #tpu.dimension_semantics<arbitrary>], iteration_bounds = array<i64: 1, 1, 1>, scalar_prefetch = 0 : i64, scratch_operands = 1 : i64, tpu.core_type = #tpu.core_type<tc>, window_params = [{transform_indices = @transform_0, window_bounds = array<i64: 16, 256>}, {transform_indices = @transform_1, window_bounds = array<i64: 32, 256>}, {transform_indices = @transform_2, window_bounds = array<i64: 16, 32>}, {transform_indices = @transform_3, window_bounds = array<i64: 16, 32>}]} {
    %c0_i32 = arith.constant 0 : i32
    %0 = arith.cmpi eq, %arg2, %c0_i32 : i32
    %1 = arith.extui %0 : i1 to i32
    %c0_i32_0 = arith.constant 0 : i32
    %2 = arith.cmpi ne, %1, %c0_i32_0 : i32
    scf.if %2 {
      %cst_10 = arith.constant 0.000000e+00 : f32
      %12 = vector.broadcast %cst_10 : f32 to vector<16x32xf32>
      %c0_11 = arith.constant 0 : index
      %c0_12 = arith.constant 0 : index
      %13 = vector.load %arg7[%c0_11, %c0_12] : memref<16x32xf32, #tpu.memory_space<vmem>>, vector<16x32xf32>
      tpu.vector_store %arg7[%c0_11, %c0_12], %12 {strides = array<i32>} : memref<16x32xf32, #tpu.memory_space<vmem>>, vector<16x32xf32>,
    } else {
    }
    %c0 = arith.constant 0 : index
    %c0_1 = arith.constant 0 : index
    %3 = vector.load %arg7[%c0, %c0_1] : memref<16x32xf32, #tpu.memory_space<vmem>>, vector<16x32xf32>
    %c0_2 = arith.constant 0 : index
    %c0_3 = arith.constant 0 : index
    %4 = vector.load %arg3[%c0_2, %c0_3] : memref<16x256xbf16, #tpu.memory_space<vmem>>, vector<16x256xbf16>
    %c0_4 = arith.constant 0 : index
    %c0_5 = arith.constant 0 : index
    %5 = vector.load %arg4[%c0_4, %c0_5] : memref<32x256xbf16, #tpu.memory_space<vmem>>, vector<32x256xbf16>
    %cst = arith.constant dense<0.000000e+00> : vector<16x32xf32>
    %6 = tpu.matmul %4, %5, %cst {dimension_numbers = #tpu.dot_dimension_numbers<[1], [1], [0], [0], [0, 0, 1, 0], [], []>} : vector<16x256xbf16>, vector<32x256xbf16>, vector<16x32xf32> -> vector<16x32xf32>
    %7 = arith.addf %3, %6 : vector<16x32xf32>
    %c0_6 = arith.constant 0 : index
    %c0_7 = arith.constant 0 : index
    %8 = vector.load %arg7[%c0_6, %c0_7] : memref<16x32xf32, #tpu.memory_space<vmem>>, vector<16x32xf32>
    tpu.vector_store %arg7[%c0_6, %c0_7], %7 {strides = array<i32>} : memref<16x32xf32, #tpu.memory_space<vmem>>, vector<16x32xf32>,
    %c0_i32_8 = arith.constant 0 : i32
    %9 = arith.cmpi eq, %arg2, %c0_i32_8 : i32
    %10 = arith.extui %9 : i1 to i32
    %c0_i32_9 = arith.constant 0 : i32
    %11 = arith.cmpi ne, %10, %c0_i32_9 : i32
    scf.if %11 {
      %c0_10 = arith.constant 0 : index
      %c0_11 = arith.constant 0 : index
      %12 = vector.load %arg7[%c0_10, %c0_11] : memref<16x32xf32, #tpu.memory_space<vmem>>, vector<16x32xf32>
      %c0_12 = arith.constant 0 : index
      %c0_13 = arith.constant 0 : index
      %13 = vector.load %arg5[%c0_12, %c0_13] : memref<16x32xf32, #tpu.memory_space<vmem>>, vector<16x32xf32>
      %14 = arith.addf %12, %13 : vector<16x32xf32>
      %c0_14 = arith.constant 0 : index
      %c0_15 = arith.constant 0 : index
      %15 = vector.load %arg6[%c0_14, %c0_15] : memref<16x32xf32, #tpu.memory_space<vmem>>, vector<16x32xf32>
      tpu.vector_store %arg6[%c0_14, %c0_15], %14 {strides = array<i32>} : memref<16x32xf32, #tpu.memory_space<vmem>>, vector<16x32xf32>,
    } else {
    }
    return
  }
  func.func @transform_0(%arg0: i32, %arg1: i32, %arg2: i32) -> (i32, i32) {
    %c0_i32 = arith.constant 0 : i32
    return %arg0, %arg2 : i32, i32
  }
  func.func @transform_1(%arg0: i32, %arg1: i32, %arg2: i32) -> (i32, i32) {
    %c0_i32 = arith.constant 0 : i32
    return %arg1, %arg2 : i32, i32
  }
  func.func @transform_2(%arg0: i32, %arg1: i32, %arg2: i32) -> (i32, i32) {
    %c0_i32 = arith.constant 0 : i32
    return %arg0, %arg1 : i32, i32
  }
  func.func @transform_3(%arg0: i32, %arg1: i32, %arg2: i32) -> (i32, i32) {
    %c0_i32 = arith.constant 0 : i32
    return %arg0, %arg1 : i32, i32
  }
}

module attributes {stable_mosaic.version = 11 : i64} {
  func.func @_matmul_kernel(%arg0: i32, %arg1: i32, %arg2: i32, %arg3: memref<16x32xbf16, #tpu.memory_space<vmem>>, %arg4: memref<64x32xbf16, #tpu.memory_space<vmem>>, %arg5: memref<16x64xf32, #tpu.memory_space<vmem>>, %arg6: memref<16x64xf32, #tpu.memory_space<vmem>>) attributes {dimension_semantics = [#tpu.dimension_semantics<parallel>, #tpu.dimension_semantics<parallel>, #tpu.dimension_semantics<arbitrary>], iteration_bounds = array<i64: 1, 1, 1>, scalar_prefetch = 0 : i64, scratch_operands = 1 : i64, tpu.core_type = #tpu.core_type<tc>, window_params = [{transform_indices = @transform_0, window_bounds = array<i64: 16, 32>}, {transform_indices = @transform_1, window_bounds = array<i64: 64, 32>}, {transform_indices = @transform_2, window_bounds = array<i64: 16, 64>}]} {
    %c0_i32 = arith.constant 0 : i32
    %0 = arith.cmpi eq, %arg2, %c0_i32 : i32
    %1 = arith.extui %0 : i1 to i32
    %c0_i32_0 = arith.constant 0 : i32
    %2 = arith.cmpi ne, %1, %c0_i32_0 : i32
    scf.if %2 {
      %cst_10 = arith.constant 0.000000e+00 : f32
      %12 = vector.broadcast %cst_10 : f32 to vector<16x64xf32>
      %c0_11 = arith.constant 0 : index
      %c0_12 = arith.constant 0 : index
      %13 = vector.load %arg6[%c0_11, %c0_12] : memref<16x64xf32, #tpu.memory_space<vmem>>, vector<16x64xf32>
      tpu.vector_store %arg6[%c0_11, %c0_12], %12 {strides = array<i32>} : memref<16x64xf32, #tpu.memory_space<vmem>>, vector<16x64xf32>,
    } else {
    }
    %c0 = arith.constant 0 : index
    %c0_1 = arith.constant 0 : index
    %3 = vector.load %arg6[%c0, %c0_1] : memref<16x64xf32, #tpu.memory_space<vmem>>, vector<16x64xf32>
    %c0_2 = arith.constant 0 : index
    %c0_3 = arith.constant 0 : index
    %4 = vector.load %arg3[%c0_2, %c0_3] : memref<16x32xbf16, #tpu.memory_space<vmem>>, vector<16x32xbf16>
    %c0_4 = arith.constant 0 : index
    %c0_5 = arith.constant 0 : index
    %5 = vector.load %arg4[%c0_4, %c0_5] : memref<64x32xbf16, #tpu.memory_space<vmem>>, vector<64x32xbf16>
    %cst = arith.constant dense<0.000000e+00> : vector<16x64xf32>
    %6 = tpu.matmul %4, %5, %cst {dimension_numbers = #tpu.dot_dimension_numbers<[1], [1], [0], [0], [0, 0, 1, 0], [], []>} : vector<16x32xbf16>, vector<64x32xbf16>, vector<16x64xf32> -> vector<16x64xf32>
    %7 = arith.addf %3, %6 : vector<16x64xf32>
    %c0_6 = arith.constant 0 : index
    %c0_7 = arith.constant 0 : index
    %8 = vector.load %arg6[%c0_6, %c0_7] : memref<16x64xf32, #tpu.memory_space<vmem>>, vector<16x64xf32>
    tpu.vector_store %arg6[%c0_6, %c0_7], %7 {strides = array<i32>} : memref<16x64xf32, #tpu.memory_space<vmem>>, vector<16x64xf32>,
    %c0_i32_8 = arith.constant 0 : i32
    %9 = arith.cmpi eq, %arg2, %c0_i32_8 : i32
    %10 = arith.extui %9 : i1 to i32
    %c0_i32_9 = arith.constant 0 : i32
    %11 = arith.cmpi ne, %10, %c0_i32_9 : i32
    scf.if %11 {
      %c0_10 = arith.constant 0 : index
      %c0_11 = arith.constant 0 : index
      %12 = vector.load %arg6[%c0_10, %c0_11] : memref<16x64xf32, #tpu.memory_space<vmem>>, vector<16x64xf32>
      %c0_12 = arith.constant 0 : index
      %c0_13 = arith.constant 0 : index
      %13 = vector.load %arg5[%c0_12, %c0_13] : memref<16x64xf32, #tpu.memory_space<vmem>>, vector<16x64xf32>
      tpu.vector_store %arg5[%c0_12, %c0_13], %12 {strides = array<i32>} : memref<16x64xf32, #tpu.memory_space<vmem>>, vector<16x64xf32>,
    } else {
    }
    return
  }
  func.func @transform_0(%arg0: i32, %arg1: i32, %arg2: i32) -> (i32, i32) {
    %c0_i32 = arith.constant 0 : i32
    return %arg0, %arg2 : i32, i32
  }
  func.func @transform_1(%arg0: i32, %arg1: i32, %arg2: i32) -> (i32, i32) {
    %c0_i32 = arith.constant 0 : i32
    return %arg1, %arg2 : i32, i32
  }
  func.func @transform_2(%arg0: i32, %arg1: i32, %arg2: i32) -> (i32, i32) {
    %c0_i32 = arith.constant 0 : i32
    return %arg0, %arg1 : i32, i32
  }
}

</mosaic_0001>

<bundles_post_ra>
// kernel: llama_forward.17
= control target key start
LH: loop header
LB: loop body
LE: loop exit
PB: predicated region body
PF: predicated region fallthrough
CT: control target
= control target key end

     0   :  { %vm70_vm0 = vcmask 261120   ;;  %vm16_vm1 = vcmask 785408   ;;  %v202_v0 = vmov 0.0   ;;  %vm203_vm2 = vmmov 0   ;;  %s257_s1 = inlined_call_operand.vmem [shape: bf16[96,32], index: 1, kind: input, shape index: {}]   ;;  %s258_s0 = inlined_call_operand.vmem [shape: bf16[16,32], index: 0, kind: input, shape index: {}]   ;;  %s259_s2 = inlined_call_operand.vmem [shape: bf16[16,96], index: 2, kind: output, shape index: {}]  }
   0x1   :  { %177 = vmatprep.subr.bf16.mxu0 %v202_v0  ;;  %v195_v1 = vld [vmem:[%s257_s1] sm:$0xff]   ;;  %189 = vmatprep.mubr.msk.bf16.mxu0 %vm203_vm2, %v202_v0  ;;  %17 = vst.msk [vmem:[#allocation2] sm:$0xff] %vm16_vm1, %v202_v0  ;;  %18 = vst.msk [vmem:[#allocation2 + $0x8] sm:$0xff] %vm16_vm1, %v202_v0  ;;  %v196_v3 = vld [vmem:[%s257_s1 + $0x8] sm:$0xff]   ;;  %vm151_vm3 = vcmask 781312  }
   0x2   :  { %v75_v2 = vsel %vm70_vm0, %v195_v1, 0  ;;  %v78_v4 = vsel %vm70_vm0, %v196_v3, 0  ;;  %v197_v5 = vld [vmem:[%s257_s1 + $0x10] sm:$0xff]   ;;  %v198_v7 = vld [vmem:[%s257_s1 + $0x18] sm:$0xff]   ;;  %v199_v9 = vld [vmem:[%s257_s1 + $0x20] sm:$0xff]  }
   0x3   :  { %178 = vmatpush3.bf16.xpose.msra.mxu0 %v75_v2  ;;  %v81_v6 = vsel %vm70_vm0, %v197_v5, 0  ;;  %v84_v8 = vsel %vm70_vm0, %v198_v7, 0  ;;  %v87_v10 = vsel %vm70_vm0, %v199_v9, 0  ;;  %v200_v11 = vld [vmem:[%s257_s1 + $0x28] sm:$0xff]   ;;  %v201_v13 = vld [vmem:[%s258_s0] sm:$0xff]  }
   0x4   :  { %179 = vmatprep.subr.bf16.mxu0 %v202_v0  ;;  %v90_v12 = vsel %vm70_vm0, %v200_v11, 0 }
   0x8   :  { %v19_v14 = vld [vmem:[#allocation2] sm:$0xff]  ;;  %v20_v16 = vld [vmem:[#allocation2 + $0x8] sm:$0xff] }
   0xb   :  { %180 = vmatpush3.bf16.xpose.msra.mxu0 %v78_v4 }
   0xc   :  { %181 = vmatprep.subr.bf16.mxu0 %v202_v0 }
  0x13   :  { %182 = vmatpush3.bf16.xpose.msra.mxu0 %v81_v6 }
  0x14   :  { %183 = vmatprep.subr.bf16.mxu0 %v202_v0 }
  0x1b   :  { %184 = vmatpush3.bf16.xpose.msra.mxu0 %v84_v8 }
  0x1c   :  { %185 = vmatprep.subr.bf16.mxu0 %v202_v0 }
  0x23   :  { %186 = vmatpush3.bf16.xpose.msra.mxu0 %v87_v10 }
  0x24   :  { %187 = vmatprep.subr.bf16.mxu0 %v202_v0 }
  0x2b   :  { %188 = vmatpush3.bf16.xpose.msra.mxu0 %v90_v12 }
  0x32   :  { %190 = vmatmul.mubr.msk.bf16.vlgmr.msra.gmra.mrb[0].mxu0 %vm70_vm0, %v201_v13 }
 0x105   :  { %v126_v15 = vpop.f32.mrb[0].mxu0 }
 0x106   :  { %v133_v17 = vadd.f32 %v126_v15, %v19_v14  ;;  %v191_v18 = vpop.f32.mrb[1].mxu0 }
 0x107   :  { %v129_v19 = vpop.f32.mrb[2].mxu0 }
 0x108   :  { %136 = vst.msk [vmem:[#allocation2] sm:$0xff] %vm16_vm1, %v133_v17  ;;  %v134_v20 = vadd.f32 %v129_v19, %v20_v16  ;;  %v192_v21 = vpop.f32.mrb[3].mxu0 }
 0x10a   :  { %137 = vst.msk [vmem:[#allocation2 + $0x8] sm:$0xff] %vm16_vm1, %v134_v20 }
 0x10f   :  { %v141_v22 = vld [vmem:[#allocation2] sm:$0xff] }
 0x110   :  { %v168_v23 = vpack.c.bf16 %v141_v22, %v141_v22 }
 0x111   :  { %v142_v24 = vld [vmem:[#allocation2 + $0x8] sm:$0xff] }
 0x112   :  { %152 = vst.msk [vmem:[%s259_s2] sm:$0xf] %vm151_vm3, %v168_v23  ;;  %v169_v25 = vpack.c.bf16 %v142_v24, %v142_v24 }
 0x114   :  { %153 = vst.msk [vmem:[%s259_s2 + $0x4] sm:$0xf] %vm151_vm3, %v169_v25 }

// kernel: llama_forward.16
= control target key start
LH: loop header
LB: loop body
LE: loop exit
PB: predicated region body
PF: predicated region fallthrough
CT: control target
= control target key end

     0   :  { %vm15_vm0 = vcmask 261120   ;;  %vm48_vm1 = vcmask 257024   ;;  %s94_s0 = inlined_call_operand.vmem [shape: f32[16,32], index: 0, kind: input, shape index: {}]   ;;  %s95_s1 = inlined_call_operand.vmem [shape: f32[1,32], index: 1, kind: input, shape index: {}]   ;;  %s96_s2 = inlined_call_operand.vmem [shape: bf16[16,32], index: 2, kind: output, shape index: {}]  }
   0x1   :  { %v11_v0 = vld [vmem:[%s94_s0] sm:$0xff]  ;;  %v12_v1 = vld [vmem:[%s94_s0 + $0x8] sm:$0xff] }
   0x2   :  { %v13_v2 = vmul.f32 %v11_v0, %v11_v0  ;;  %v14_v3 = vmul.f32 %v12_v1, %v12_v1  ;;  %v55_v13 = vld [vmem:[%s95_s1] ss:$0 sm:$0xff] }
   0x4   :  { %v16_v4 = vsel %vm15_vm0, %v13_v2, 0.0  ;;  %v19_v5 = vsel %vm15_vm0, %v14_v3, 0.0 }
   0x5   :  { %17 = vadd.xlane.f32.xlu0 %v16_v4 }
   0x9   :  { %20 = vadd.xlane.f32.xlu0 %v19_v5 }
  0x92   :  { %v18_v6 = vpop.xlane.xlu0 %17 }
  0x93   :  { %v23_v7 = vmul.f32 0.03125, %v18_v6 }
  0x95   :  { %v25_v8 = vadd.f32 1e-05, %v23_v7 }
  0x96   :  { %v21_v9 = vpop.xlane.xlu0 %20 }
  0x97   :  { %60 = vrsqrt.f32 %v25_v8  ;;  %v24_v10 = vmul.f32 0.03125, %v21_v9 }
  0x99   :  { %v26_v11 = vadd.f32 1e-05, %v24_v10 }
  0x9b   :  { %62 = vrsqrt.f32 %v26_v11 }
  0xa1   :  { %v61_v12 = vpop.eup %60 }
  0xa2   :  { %v29_v14 = vmul.f32 %v61_v12, %v11_v0 }
  0xa4   :  { %v38_v15 = vmul.f32 %v55_v13, %v29_v14 }
  0xa5   :  { %v63_v16 = vpop.eup %62 }
  0xa6   :  { %v58_v17 = vpack.c.bf16 %v38_v15, %v38_v15  ;;  %v30_v18 = vmul.f32 %v63_v16, %v12_v1 }
  0xa8   :  { %49 = vst.msk [vmem:[%s96_s2] sm:$0xf] %vm48_vm1, %v58_v17  ;;  %v39_v19 = vmul.f32 %v55_v13, %v30_v18 }
  0xaa   :  { %v59_v20 = vpack.c.bf16 %v39_v19, %v39_v19 }
  0xac   :  { %50 = vst.msk [vmem:[%s96_s2 + $0x4] sm:$0xf] %vm48_vm1, %v59_v20 }

// kernel: llama_forward.19
= control target key start
LH: loop header
LB: loop body
LE: loop exit
PB: predicated region body
PF: predicated region fallthrough
CT: control target
= control target key end

     0   :  { %vm19_vm0 = vcmask 261120   ;;  %v135_v0 = vmov 0.0   ;;  %vm136_vm1 = vmmov 0   ;;  %s187_s1 = inlined_call_operand.vmem [shape: bf16[32,32], index: 1, kind: input, shape index: {}]   ;;  %s188_s0 = inlined_call_operand.vmem [shape: bf16[16,32], index: 0, kind: input, shape index: {}]   ;;  %s189_s2 = inlined_call_operand.vmem [shape: f32[16,32], index: 2, kind: input, shape index: {}]   ;;  %s190_s3 = inlined_call_operand.vmem [shape: f32[16,32], index: 3, kind: output, shape index: {}]  }
   0x1   :  { %122 = vmatprep.subr.bf16.mxu0 %v135_v0  ;;  %v132_v1 = vld [vmem:[%s187_s1] sm:$0xff]   ;;  %20 = vst.msk [vmem:[#allocation2] sm:$0xff] %vm19_vm0, %v135_v0  ;;  %21 = vst.msk [vmem:[#allocation2 + $0x8] sm:$0xff] %vm19_vm0, %v135_v0  ;;  %126 = vmatprep.mubr.msk.bf16.mxu0 %vm136_vm1, %v135_v0  ;;  %v133_v3 = vld [vmem:[%s187_s1 + $0x8] sm:$0xff]  }
   0x2   :  { %v50_v2 = vsel %vm19_vm0, %v132_v1, 0  ;;  %v53_v4 = vsel %vm19_vm0, %v133_v3, 0  ;;  %v134_v5 = vld [vmem:[%s188_s0] sm:$0xff]   ;;  %v106_v16 = vld [vmem:[%s189_s2 + $0x8] sm:$0xff] }
   0x3   :  { %123 = vmatpush3.bf16.xpose.msra.mxu0 %v50_v2  ;;  %v105_v14 = vld [vmem:[%s189_s2] sm:$0xff] }
   0x4   :  { %124 = vmatprep.subr.bf16.mxu0 %v135_v0 }
   0x8   :  { %v22_v6 = vld [vmem:[#allocation2] sm:$0xff]  ;;  %v23_v8 = vld [vmem:[#allocation2 + $0x8] sm:$0xff] }
   0xb   :  { %125 = vmatpush3.bf16.xpose.msra.mxu0 %v53_v4 }
  0x12   :  { %127 = vmatmul.mubr.msk.bf16.vlgmr.msra.gmra.mrb[0].mxu0 %vm19_vm0, %v134_v5 }
  0xe5   :  { %v89_v7 = vpop.f32.mrb[0].mxu0 }
  0xe6   :  { %v96_v9 = vadd.f32 %v89_v7, %v22_v6  ;;  %v128_v10 = vpop.f32.mrb[1].mxu0 }
  0xe7   :  { %v92_v11 = vpop.f32.mrb[2].mxu0 }
  0xe8   :  { %98 = vst.msk [vmem:[#allocation2] sm:$0xff] %vm19_vm0, %v96_v9  ;;  %v97_v12 = vadd.f32 %v92_v11, %v23_v8  ;;  %v129_v13 = vpop.f32.mrb[3].mxu0 }
  0xea   :  { %99 = vst.msk [vmem:[#allocation2 + $0x8] sm:$0xff] %vm19_vm0, %v97_v12 }
  0xef   :  { %v103_v15 = vld [vmem:[#allocation2] sm:$0xff] }
  0xf0   :  { %v107_v17 = vadd.f32 %v105_v14, %v103_v15 }
  0xf1   :  { %v104_v18 = vld [vmem:[#allocation2 + $0x8] sm:$0xff] }
  0xf2   :  { %109 = vst.msk [vmem:[%s190_s3] sm:$0xff] %vm19_vm0, %v107_v17  ;;  %v108_v19 = vadd.f32 %v106_v16, %v104_v18 }
  0xf4   :  { %110 = vst.msk [vmem:[%s190_s3 + $0x8] sm:$0xff] %vm19_vm0, %v108_v19 }

// kernel: llama_forward.18
= control target key start
LH: loop header
LB: loop body
LE: loop exit
PB: predicated region body
PF: predicated region fallthrough
CT: control target
= control target key end

     0   :  { %s1299_s24 = smov 0   ;;  %s1301_s25 = smov 0   ;;  %s1387_s0 = inlined_call_operand.vmem [shape: bf16[2,4,8,8], index: 0, kind: input, shape index: {}]   ;;  %s1388_s1 = inlined_call_operand.vmem [shape: bf16[2,4,8,8], index: 1, kind: input, shape index: {}]   ;;  %s1389_s2 = inlined_call_operand.vmem [shape: bf16[2,4,8,8], index: 2, kind: input, shape index: {}]   ;;  %s1390_s3 = inlined_call_operand.vmem [shape: f32[8,8], index: 3, kind: input, shape index: {}, may-alias: {3,5}]   ;;  %s1391_s4 = inlined_call_operand.vmem [shape: f32[8,8], index: 4, kind: input, shape index: {}, may-alias: {4,6}]   ;;  %s1392_s5 = inlined_call_operand.vmem [shape: f32[8,8], index: 5, kind: input, shape index: {}, may-alias: {3,5}]   ;;  %s1393_s6 = inlined_call_operand.vmem [shape: f32[8,8], index: 6, kind: input, shape index: {}, may-alias: {4,6}]   ;;  %s1394_s7 = inlined_call_operand.vmem [shape: bf16[2,4,8,8], index: 7, kind: output, shape index: {}]  }
   0x1   :  { %s1303_s26 = smov 0   ;;  %s1305_s27 = smov 0  }
   0x2   :  { %s1307_s28 = smov 0  }
   0x3 LB: > { %s39_s29 = sadd.s32 1, %s1243_s26  ;;  %s43_s30 = sadd.s32 1, %s1247_s27  ;;  %s1251_s28 = sphi %s1307_s28, %s17_s28   ;;  %s1247_s27 = sphi %s1305_s27, %s1398_s27   ;;  %s1243_s26 = sphi %s1303_s26, %s1397_s26   ;;  %s1239_s25 = sphi %s1301_s25, %s1396_s25   ;;  %s1235_s24 = sphi %s1299_s24, %s1395_s24  }
   0x4   : > { %p41_p0 = scmp.ge.s32.totalorder %s39_s29, 4  ;;  %p1128_p1 = scmp.ge.s32.totalorder %s1251_s28, 1 }
   0x5   : > { %p385_p2 = scmp.lt.s32.totalorder %s1251_s28, 9 }
   0x6   : > { %s1400_s29 = smov (%p41_p0, %s39_s29), 0  ;;  %s1402_s30 = smov (!%p41_p0, %s43_s30), %s1247_s27 }
   0x7   : > { %p386_p3 = pnand %p1128_p1, %p385_p2  ;;  %p45_p4 = scmp.ge.s32.totalorder %s1402_s30, 2 }
   0x8   : > { %p475_p5 = scmp.lt.s32.totalorder (!%p386_p3), %s1239_s25, 1  ;;  %p477_p6 = scmp.lt.s32.totalorder (!%p386_p3), %s1235_s24, 3  ;;  %vm581_vm0 = vcmask (!%p386_p3), 64512   ;;  %v1253_v6 = vmov (!%p386_p3), 0.0   ;;  %vm1255_vm1 = vmmov (!%p386_p3), 0   ;;  %v558_v9 = vld [vmem:[%s1390_s3] sm:$0xff] (!%p386_p3)  ;;  %v808_v29 = vlaneseq (!%p386_p3) }
   0x9   : > { %s1404_s30 = smov (%p45_p4, %s1402_s30), 0  ;;  %389 = sbr.rel (%p386_p3) target bundleno = 961 (0x3c1), region = 48 }
   0xa   : > { %1147 = vmatprep.subr.bf16.mxu0 (!%p386_p3), %v1253_v6  ;;  %582 = vst.msk [vmem:[#allocation5] sm:$0xff] (!%p386_p3), %vm581_vm0, %v1253_v6  ;;  %1153 = vmatprep.subr.bf16.mxu1 (!%p386_p3), %v1253_v6  ;;  %s1254_s17 = smov (!%p386_p3), 124   ;;  %s1256_s18 = smov (!%p386_p3), 4   ;;  %v743_v10 = vld [vmem:[%s1392_s5] sm:$0xff] (!%p386_p3)  ;;  %vm569_vm2 = vcmask (!%p386_p3), 31744   ;;  %vm576_vm3 = vcmask (!%p386_p3), 60416  }
   0xb   : > { %1149 = vmatprep.mubr.msk.bf16.mxu0 (!%p386_p3), %vm1255_vm1, %v1253_v6  ;;  %1155 = vmatprep.mubr.msk.bf16.mxu1 (!%p386_p3), %vm1255_vm1, %v1253_v6  ;;  %v744_v11 = vld [vmem:[%s1393_s6] sm:$0xff] (!%p386_p3)  ;;  %vm578_vm4 = vcmask (!%p386_p3), 7168   ;;  %v1257_v28 = vmov (!%p386_p3), -inf   ;;  %v809_v30 = vshrl.u32 (!%p386_p3), %v808_v29, 7  ;;  %v811_v31 = vand.u32 (!%p386_p3), 127, %v808_v29 }
   0xc   : > { %v559_v12 = vld [vmem:[%s1391_s4] sm:$0xff] (!%p386_p3)  ;;  %579 = vst.msk [vmem:[#allocation3] sm:$0xff] (!%p386_p3), %vm578_vm4, %v1257_v28  ;;  %580 = vst.msk [vmem:[#allocation4] sm:$0xff] (!%p386_p3), %vm578_vm4, %v1253_v6  ;;  %v1258_v38 = vmov (!%p386_p3), 0   ;;  %vm850_vm6 = vcmask (!%p386_p3), 1043456  }
   0xd   : > { %vm812_vm5 = vcmp.le.s32.totalorder (!%p386_p3), %v811_v31, %v809_v30  ;;  %1205 = vset.pattern.permute.xlu1 (!%p386_p3), %v1258_v38  ;;  %1206 = vset.pattern.permute.xlu0 (!%p386_p3), %v1258_v38 }
  0x10   : > { %s1406_s25 = smov (!%p475_p5, %s1239_s25), 1  ;;  %s1408_s24 = smov (!%p477_p6, %s1235_s24), 3 }
  0x11   : > { %s1129_s8 = sshll.u32 %s1406_s25, 2  ;;  %v838_v59 = vld [vmem:[#allocation5] sm:$0xff] }
  0x12   : > { %s483_s9 = sadd.s32 %s1129_s8, %s1408_s24 }
  0x13   : > { %s1329_s10 = sshll.u32 %s483_s9, 2  ;;  %v814_v39 = vld [vmem:[#allocation3] sm:$0xff]  ;;  %v830_v53 = vld [vmem:[#allocation4] sm:$0xff] }
  0x14   : > { %s498_s13 = scalar_lea.vmem %s1388_s1, %s1329_s10  ;;  %s485_s16 = scalar_lea.vmem %s1387_s0, %s1329_s10 }
  0x15   : > { %v741_v0 = vld [vmem:[%s498_s13] sm:$0xf]  ;;  %s513_s12 = scalar_lea.vmem %s1389_s2, %s1329_s10  ;;  %s550_s15 = scalar_lea.vmem %s1394_s7, %s1329_s10 }
  0x16   : > { %v556_v1 = vld [vmem:[%s485_s16] sm:$0xf]  ;;  %v742_v2 = vunpack.c.l.bf16 %v741_v0 }
  0x17   : > { %v557_v3 = vunpack.c.l.bf16 %v556_v1  ;;  %v846_v44 = vld [vmem:[%s513_s12] sm:$0xf] }
  0x18   : > { %v745_v4 = vsub.f32 0.0, %v742_v2  ;;  %v756_v16 = vmul.f32 %v743_v10, %v742_v2  ;;  %v852_v45 = vsel %vm850_vm6, %v846_v44, 0 }
  0x19   : > { %v560_v5 = vsub.f32 0.0, %v557_v3  ;;  %v571_v14 = vmul.f32 %v558_v9, %v557_v3  ;;  %1154 = vmatpush3.bf16.msra.mxu1 %v852_v45 }
  0x1a   : > { %747 = vrot.lane.b32.xlu1 %v745_v4, %s1254_s17 }
  0x1b   : > { %562 = vrot.lane.b32.xlu0 %v560_v5, %s1254_s17 }
  0x1e   : > { %751 = vrot.lane.b32.xlu1 %v742_v2, %s1256_s18 }
  0x1f   : > { %566 = vrot.lane.b32.xlu0 %v557_v3, %s1256_s18 }
  0x8c   : > { %v748_v7 = vpop.permute.xlu1 %747 }
  0x8d   : > { %v563_v8 = vpop.permute.xlu0 %562 }
  0x90   : > { %v752_v13 = vpop.permute.xlu1 %751 }
  0x91   : > { %v567_v15 = vpop.permute.xlu0 %566  ;;  %v755_v17 = vsel %vm569_vm2, %v748_v7, %v752_v13 }
  0x92   : > { %v570_v18 = vsel %vm569_vm2, %v563_v8, %v567_v15  ;;  %v757_v19 = vmul.f32 %v755_v17, %v744_v11 }
  0x93   : > { %v572_v20 = vmul.f32 %v570_v18, %v559_v12 }
  0x94   : > { %v758_v22 = vadd.f32 %v757_v19, %v756_v16 }
  0x95   : > { %v573_v21 = vadd.f32 %v572_v20, %v571_v14 }
  0x96   : > { %v760_v24 = vpack.c.bf16 %v758_v22, %v758_v22 }
  0x97   : > { %v574_v23 = vmul.f32 0.35355338, %v573_v21 }
  0x98   : > { %v766_v26 = vsel %vm581_vm0, %v760_v24, 0 }
  0x99   : > { %v575_v25 = vpack.c.bf16 %v574_v23, %v574_v23  ;;  %1148 = vmatpush3.bf16.xpose.msra.mxu0 %v766_v26 }
  0x9b   : > { %577 = vst.msk [vmem:[#allocation2] sm:$0xf] %vm576_vm3, %v575_v25 }
  0xa2   : > { %v759_v27 = vld [vmem:[#allocation2] sm:$0xf] }
  0xa3   : > { %1150 = vmatmul.mubr.msk.bf16.vlgmr.msra.gmra.mrb[0].mxu0 %vm581_vm0, %v759_v27 }
 0x176   : > { %v802_v32 = vpop.f32.mrb[0].mxu0 }
 0x177   : > { %v813_v33 = vsel %vm812_vm5, %v802_v32, -inf  ;;  %v1151_v34 = vpop.f32.mrb[1].mxu0 }
 0x178   : > { %v805_v35 = vpop.f32.mrb[2].mxu0  ;;  %v815_v36 = vsel %vm581_vm0, %v813_v33, -inf }
 0x179   : > { %816 = vmax.xlane.f32.xlu0 %v815_v36  ;;  %v1152_v37 = vpop.f32.mrb[3].mxu0 }
 0x206   : > { %v817_v40 = vpop.xlane.xlu0 %816 }
 0x207   : > { %v818_v41 = vmax.f32 %v814_v39, %v817_v40 }
 0x209   : > { %v819_v42 = vsub.f32 %v814_v39, %v818_v41  ;;  %896 = vst.msk [vmem:[#allocation3] sm:$0xff] %vm578_vm4, %v818_v41  ;;  %824 = vperm.xlu1 %1205, %v818_v41  }
 0x20b   : > { %v820_v43 = vmul.f32 1.442695, %v819_v42 }
 0x20d   : > { %1207 = vpow2.f32 %v820_v43 }
 0x217   : > { %v1208_v46 = vpop.eup %1207 }
 0x218   : > { %841 = vperm.xlu0 %1206, %v1208_v46   ;;  %v831_v54 = vmul.f32 %v1208_v46, %v830_v53 }
 0x288   : > { %v825_v47 = vpop.permute.xlu1 %824 }
 0x289   : > { %v827_v48 = vsub.f32 %v813_v33, %v825_v47 }
 0x28b   : > { %v828_v49 = vmul.f32 1.442695, %v827_v48 }
 0x28d   : > { %1209 = vpow2.f32 %v828_v49 }
 0x297   : > { %v1210_v50 = vpop.eup %1209  ;;  %v842_v60 = vpop.permute.xlu0 %841 }
 0x298   : > { %v832_v51 = vsel %vm581_vm0, %v1210_v50, 0.0  ;;  %v845_v52 = vpack.c.bf16 %v1210_v50, %v1210_v50  ;;  %v844_v61 = vmul.f32 %v842_v60, %v838_v59 }
 0x299   : > { %833 = vadd.xlane.f32.xlu1 %v832_v51 }
 0x29a   : > { %1156 = vmatmul.mubr.msk.bf16.vlgmr.msra.gmra.mrb[0].mxu1 %vm581_vm0, %v845_v52 }
 0x326   : > { %v834_v55 = vpop.xlane.xlu1 %833 }
 0x327   : > { %v835_v56 = vadd.f32 %v834_v55, %v831_v54 }
 0x329   : > { %837 = vst.msk [vmem:[#allocation4] sm:$0xff] %vm578_vm4, %v835_v56 }
 0x330   : > { %v900_v57 = vld [vmem:[#allocation4] sm:$0xff] }
 0x331   : > { %1211 = vrcp.f32 %v900_v57 }
 0x33b   : > { %v1212_v58 = vpop.eup %1211 }
 0x33c   : > { %905 = vperm.xlu1 %1205, %v1212_v58  }
 0x36d   : > { %v888_v62 = vpop.f32.mrb[0].mxu1 }
 0x36e   : > { %v894_v63 = vadd.f32 %v888_v62, %v844_v61  ;;  %v1157_v0 = vpop.f32.mrb[1].mxu1 }
 0x36f   : > { %v891_v1 = vpop.f32.mrb[2].mxu1 }
 0x370   : > { %895 = vst.msk [vmem:[#allocation5] sm:$0xff] %vm581_vm0, %v894_v63  ;;  %v1158_v2 = vpop.f32.mrb[3].mxu1 }
 0x377   : > { %v902_v3 = vld [vmem:[#allocation5] sm:$0xff] }
 0x3bb   : > { %v906_v4 = vpop.permute.xlu1 %905 }
 0x3bc   : > { %v908_v5 = vmul.f32 %v906_v4, %v902_v3 }
 0x3be   : > { %v909_v6 = vpack.c.bf16 %v908_v5, %v908_v5 }
 0x3c0   : > { %911 = vst.msk [vmem:[%s550_s15] sm:$0xf] %vm576_vm3, %v909_v6 }
 0x3c1 PF: > { %s17_s28 = sadd.s32 1, %s1251_s28   ;;  %s1395_s24 = smov %s1243_s26 }
 0x3c2   : > { %p14_p7 = scmp.ge.s32.totalorder %s17_s28, 10   ;;  %s1396_s25 = smov %s1247_s27 }
 0x3c3   : > { %s1397_s26 = smov %s1400_s29  ;;  %s1398_s27 = smov %s1404_s30 }
 0x3c4   :  { %16 = sbr.rel (!%p14_p7) target bundleno = 3 (0x3), region = 112 }

// kernel: llama_forward.22
= control target key start
LH: loop header
LB: loop body
LE: loop exit
PB: predicated region body
PF: predicated region fallthrough
CT: control target
= control target key end

     0   :  { %vm19_vm0 = vcmask 261120   ;;  %v137_v1 = vmov 0.0   ;;  %s194_s1 = inlined_call_operand.vmem [shape: bf16[32,256], index: 1, kind: input, shape index: {}]   ;;  %s195_s0 = inlined_call_operand.vmem [shape: bf16[16,256], index: 0, kind: input, shape index: {}]   ;;  %s196_s2 = inlined_call_operand.vmem [shape: f32[16,32], index: 2, kind: input, shape index: {}]   ;;  %s197_s3 = inlined_call_operand.vmem [shape: f32[16,32], index: 3, kind: output, shape index: {}]  }
   0x1   :  { %v128_v0 = vld [vmem:[%s194_s1 + $0x4] ss:$8 sps:$4 sm:$0xff]   ;;  %20 = vst.msk [vmem:[#allocation2] sm:$0xff] %vm19_vm0, %v137_v1  ;;  %21 = vst.msk [vmem:[#allocation2 + $0x8] sm:$0xff] %vm19_vm0, %v137_v1  ;;  %v130_v2 = vld [vmem:[%s194_s1] ss:$8 sps:$4 sm:$0xff]  }
   0x2   :  { %60 = vmatprep.subr.bf16.mxu0 %v128_v0  ;;  %v131_v3 = vld [vmem:[%s194_s1 + $0x14] ss:$8 sps:$4 sm:$0xff]   ;;  %v136_v4 = vld [vmem:[%s195_s0 + $0x4] ss:$8 sps:$4 sm:$0xff]   ;;  %v133_v5 = vld [vmem:[%s194_s1 + $0x10] ss:$8 sps:$4 sm:$0xff]  }
   0x3   :  { %61 = vmatpush1.bf16.xpose.msra.mxu0 %v130_v2  ;;  %92 = vmatprep.mubr.bf16.mxu0 %v136_v4  ;;  %v134_v6 = vld [vmem:[%s195_s0] ss:$8 sps:$4 sm:$0xff]  }
   0x4   :  { %62 = vmatprep.subr.bf16.mxu0 %v131_v3  ;;  %v111_v15 = vld [vmem:[%s196_s2] sm:$0xff]  ;;  %v112_v17 = vld [vmem:[%s196_s2 + $0x8] sm:$0xff] }
   0x8   :  { %v22_v7 = vld [vmem:[#allocation2] sm:$0xff]  ;;  %v23_v9 = vld [vmem:[#allocation2 + $0x8] sm:$0xff] }
   0xb   :  { %63 = vmatpush1.bf16.xpose.msra.mxu0 %v133_v5 }
  0x12   :  { %93 = vmatmul.mubr.bf16.vlgmr.msra.gmra.mrb[0].mxu0 %v134_v6 }
  0xe5   :  { %v94_v8 = vpop.f32.mrb[0].mxu0 }
  0xe6   :  { %v101_v10 = vadd.f32 %v94_v8, %v22_v7  ;;  %v96_v11 = vpop.f32.mrb[1].mxu0 }
  0xe7   :  { %v97_v12 = vpop.f32.mrb[2].mxu0 }
  0xe8   :  { %104 = vst.msk [vmem:[#allocation2] sm:$0xff] %vm19_vm0, %v101_v10  ;;  %v102_v13 = vadd.f32 %v97_v12, %v23_v9  ;;  %v99_v14 = vpop.f32.mrb[3].mxu0 }
  0xea   :  { %105 = vst.msk [vmem:[#allocation2 + $0x8] sm:$0xff] %vm19_vm0, %v102_v13 }
  0xef   :  { %v109_v16 = vld [vmem:[#allocation2] sm:$0xff] }
  0xf0   :  { %v113_v18 = vadd.f32 %v111_v15, %v109_v16 }
  0xf1   :  { %v110_v19 = vld [vmem:[#allocation2 + $0x8] sm:$0xff] }
  0xf2   :  { %115 = vst.msk [vmem:[%s197_s3] sm:$0xff] %vm19_vm0, %v113_v18  ;;  %v114_v20 = vadd.f32 %v112_v17, %v110_v19 }
  0xf4   :  { %116 = vst.msk [vmem:[%s197_s3 + $0x8] sm:$0xff] %vm19_vm0, %v114_v20 }

// kernel: llama_forward.21
= control target key start
LH: loop header
LB: loop body
LE: loop exit
PB: predicated region body
PF: predicated region fallthrough
CT: control target
= control target key end

     0   :  { %vm150_vm0 = vcmask 261120   ;;  %s849_s1 = inlined_call_operand.vmem [shape: bf16[256,32], index: 1, kind: input, shape index: {}]   ;;  %s850_s2 = inlined_call_operand.vmem [shape: bf16[256,32], index: 2, kind: input, shape index: {}]   ;;  %s851_s0 = inlined_call_operand.vmem [shape: bf16[16,32], index: 0, kind: input, shape index: {}]   ;;  %s852_s3 = inlined_call_operand.vmem [shape: bf16[16,256], index: 3, kind: output, shape index: {}]  }
   0x1   :  { %v635_v0 = vld [vmem:[%s849_s1 + $0x40] sm:$0xff]   ;;  %v637_v2 = vld [vmem:[%s849_s1 + $0x48] sm:$0xff]   ;;  %v639_v5 = vld [vmem:[%s849_s1 + $0x50] sm:$0xff]  }
   0x2   :  { %v636_v1 = vld [vmem:[%s849_s1] sm:$0xff]   ;;  %619 = vmatprep.subr.msk.bf16.mxu0 %vm150_vm0, %v635_v0  ;;  %v638_v4 = vld [vmem:[%s849_s1 + $0x8] sm:$0xff]   ;;  %v640_v9 = vld [vmem:[%s849_s1 + $0x10] sm:$0xff]  }
   0x3   :  { %v155_v3 = vsel %vm150_vm0, %v636_v1, 0  ;;  %v643_v6 = vld [vmem:[%s850_s2 + $0x40] sm:$0xff]   ;;  %v158_v7 = vsel %vm150_vm0, %v638_v4, 0  ;;  %v647_v11 = vld [vmem:[%s850_s2 + $0x48] sm:$0xff]   ;;  %v161_v13 = vsel %vm150_vm0, %v640_v9, 0  ;;  %v641_v14 = vld [vmem:[%s849_s1 + $0x58] sm:$0xff]  }
   0x4   :  { %584 = vmatpush3.bf16.xpose.msra.mxu0 %v155_v3  ;;  %v644_v8 = vld [vmem:[%s850_s2] sm:$0xff]   ;;  %627 = vmatprep.subr.msk.bf16.mxu1 %vm150_vm0, %v643_v6  ;;  %v648_v12 = vld [vmem:[%s850_s2 + $0x8] sm:$0xff]   ;;  %v651_v16 = vld [vmem:[%s850_s2 + $0x50] sm:$0xff]  }
   0x5   :  { %620 = vmatprep.subr.msk.bf16.mxu0 %vm150_vm0, %v637_v2  ;;  %v380_v10 = vsel %vm150_vm0, %v644_v8, 0  ;;  %v383_v15 = vsel %vm150_vm0, %v648_v12, 0  ;;  %v642_v17 = vld [vmem:[%s849_s1 + $0x18] sm:$0xff]   ;;  %v652_v18 = vld [vmem:[%s850_s2 + $0x10] sm:$0xff]   ;;  %v645_v20 = vld [vmem:[%s849_s1 + $0x60] sm:$0xff]  }
   0x6   :  { %602 = vmatpush3.bf16.xpose.msra.mxu1 %v380_v10  ;;  %v164_v19 = vsel %vm150_vm0, %v642_v17, 0  ;;  %v386_v21 = vsel %vm150_vm0, %v652_v18, 0  ;;  %v655_v22 = vld [vmem:[%s850_s2 + $0x58] sm:$0xff]   ;;  %v661_v23 = vld [vmem:[%s851_s0] sm:$0xff]   ;;  %v649_v26 = vld [vmem:[%s849_s1 + $0x68] sm:$0xff]  }
   0x7   :  { %628 = vmatprep.subr.msk.bf16.mxu1 %vm150_vm0, %v647_v11  ;;  %v646_v24 = vld [vmem:[%s849_s1 + $0x20] sm:$0xff]   ;;  %v656_v25 = vld [vmem:[%s850_s2 + $0x18] sm:$0xff]   ;;  %599 = vmatprep.mubr.msk.bf16.mxu0 %vm150_vm0, %v661_v23  ;;  %v650_v31 = vld [vmem:[%s849_s1 + $0x28] sm:$0xff]  }
   0x8   :  { %v167_v27 = vsel %vm150_vm0, %v646_v24, 0  ;;  %v659_v28 = vld [vmem:[%s850_s2 + $0x60] sm:$0xff]   ;;  %v389_v29 = vsel %vm150_vm0, %v656_v25, 0  ;;  %v170_v33 = vsel %vm150_vm0, %v650_v31, 0  ;;  %v653_v34 = vld [vmem:[%s849_s1 + $0x70] sm:$0xff]   ;;  %v662_v36 = vld [vmem:[%s850_s2 + $0x68] sm:$0xff]  }
   0x9   :  { %v668_v30 = vld [vmem:[%s851_s0] sm:$0xff]   ;;  %v654_v37 = vld [vmem:[%s849_s1 + $0x30] sm:$0xff]   ;;  %v663_v38 = vld [vmem:[%s850_s2 + $0x28] sm:$0xff]  }
   0xa   :  { %617 = vmatprep.mubr.msk.bf16.mxu1 %vm150_vm0, %v668_v30  ;;  %v660_v32 = vld [vmem:[%s850_s2 + $0x20] sm:$0xff]   ;;  %v173_v39 = vsel %vm150_vm0, %v654_v37, 0  ;;  %v657_v40 = vld [vmem:[%s849_s1 + $0x78] sm:$0xff]   ;;  %v395_v41 = vsel %vm150_vm0, %v663_v38, 0  ;;  %v664_v42 = vld [vmem:[%s850_s2 + $0x70] sm:$0xff]  }
   0xb   :  { %v392_v35 = vsel %vm150_vm0, %v660_v32, 0  ;;  %v658_v43 = vld [vmem:[%s849_s1 + $0x38] sm:$0xff]   ;;  %v665_v44 = vld [vmem:[%s850_s2 + $0x30] sm:$0xff]  }
   0xc   :  { %586 = vmatpush3.bf16.xpose.msra.mxu0 %v158_v7  ;;  %v176_v45 = vsel %vm150_vm0, %v658_v43, 0  ;;  %v398_v46 = vsel %vm150_vm0, %v665_v44, 0  ;;  %v666_v47 = vld [vmem:[%s850_s2 + $0x78] sm:$0xff]  }
   0xd   :  { %621 = vmatprep.subr.msk.bf16.mxu0 %vm150_vm0, %v639_v5  ;;  %v667_v48 = vld [vmem:[%s850_s2 + $0x38] sm:$0xff]  }
   0xe   :  { %604 = vmatpush3.bf16.xpose.msra.mxu1 %v383_v15  ;;  %v401_v49 = vsel %vm150_vm0, %v667_v48, 0 }
   0xf   :  { %629 = vmatprep.subr.msk.bf16.mxu1 %vm150_vm0, %v651_v16 }
  0x14   :  { %588 = vmatpush3.bf16.xpose.msra.mxu0 %v161_v13 }
  0x15   :  { %622 = vmatprep.subr.msk.bf16.mxu0 %vm150_vm0, %v641_v14 }
  0x16   :  { %606 = vmatpush3.bf16.xpose.msra.mxu1 %v386_v21 }
  0x17   :  { %630 = vmatprep.subr.msk.bf16.mxu1 %vm150_vm0, %v655_v22 }
  0x1c   :  { %590 = vmatpush3.bf16.xpose.msra.mxu0 %v164_v19 }
  0x1d   :  { %623 = vmatprep.subr.msk.bf16.mxu0 %vm150_vm0, %v645_v20 }
  0x1e   :  { %608 = vmatpush3.bf16.xpose.msra.mxu1 %v389_v29 }
  0x1f   :  { %631 = vmatprep.subr.msk.bf16.mxu1 %vm150_vm0, %v659_v28 }
  0x24   :  { %592 = vmatpush3.bf16.xpose.msra.mxu0 %v167_v27 }
  0x25   :  { %624 = vmatprep.subr.msk.bf16.mxu0 %vm150_vm0, %v649_v26 }
  0x26   :  { %610 = vmatpush3.bf16.xpose.msra.mxu1 %v392_v35 }
  0x27   :  { %632 = vmatprep.subr.msk.bf16.mxu1 %vm150_vm0, %v662_v36 }
  0x2c   :  { %594 = vmatpush3.bf16.xpose.msra.mxu0 %v170_v33 }
  0x2d   :  { %625 = vmatprep.subr.msk.bf16.mxu0 %vm150_vm0, %v653_v34 }
  0x2e   :  { %612 = vmatpush3.bf16.xpose.msra.mxu1 %v395_v41 }
  0x2f   :  { %633 = vmatprep.subr.msk.bf16.mxu1 %vm150_vm0, %v664_v42 }
  0x34   :  { %596 = vmatpush3.bf16.xpose.msra.mxu0 %v173_v39 }
  0x35   :  { %626 = vmatprep.subr.msk.bf16.mxu0 %vm150_vm0, %v657_v40 }
  0x36   :  { %614 = vmatpush3.bf16.xpose.msra.mxu1 %v398_v46 }
  0x37   :  { %634 = vmatprep.subr.msk.bf16.mxu1 %vm150_vm0, %v666_v47 }
  0x3c   :  { %598 = vmatpush3.bf16.xpose.msra.mxu0 %v176_v45 }
  0x3e   :  { %616 = vmatpush3.bf16.xpose.msra.mxu1 %v401_v49 }
  0x43   :  { %600 = vmatmul.mubr.msk.bf16.vlgmr.msra.gmra.mrb[0].mxu0 %vm150_vm0, %v661_v23 }
  0x45   :  { %618 = vmatmul.mubr.msk.bf16.vlgmr.msra.gmra.mrb[0].mxu1 %vm150_vm0, %v668_v30 }
 0x116   :  { %v236_v50 = vpop.f32.mrb[0].mxu0 }
 0x117   :  { %v575_v51 = vmul.f32 -1.442695, %v236_v50  ;;  %v238_v52 = vpop.f32.mrb[1].mxu0 }
 0x118   :  { %v576_v53 = vmul.f32 -1.442695, %v238_v52  ;;  %v240_v54 = vpop.f32.mrb[2].mxu0  ;;  %v461_v58 = vpop.f32.mrb[0].mxu1 }
 0x119   :  { %669 = vpow2.f32 %v575_v51  ;;  %v577_v55 = vmul.f32 -1.442695, %v240_v54  ;;  %v242_v56 = vpop.f32.mrb[3].mxu0  ;;  %v463_v59 = vpop.f32.mrb[1].mxu1 }
 0x11a   :  { %671 = vpow2.f32 %v576_v53  ;;  %v578_v57 = vmul.f32 -1.442695, %v242_v56  ;;  %v465_v60 = vpop.f32.mrb[2].mxu1 }
 0x11b   :  { %673 = vpow2.f32 %v577_v55  ;;  %v467_v61 = vpop.f32.mrb[3].mxu1 }
 0x11c   :  { %675 = vpow2.f32 %v578_v57 }
 0x123   :  { %v670_v62 = vpop.eup %669 }
 0x124   :  { %v672_v63 = vpop.eup %671  ;;  %v497_v0 = vadd.f32 1.0, %v670_v62 }
 0x125   :  { %v674_v1 = vpop.eup %673  ;;  %v498_v2 = vadd.f32 1.0, %v672_v63 }
 0x126   :  { %v676_v3 = vpop.eup %675  ;;  %677 = vrcp.f32 %v497_v0  ;;  %v499_v4 = vadd.f32 1.0, %v674_v1 }
 0x127   :  { %679 = vrcp.f32 %v498_v2  ;;  %v500_v5 = vadd.f32 1.0, %v676_v3 }
 0x128   :  { %681 = vrcp.f32 %v499_v4 }
 0x129   :  { %683 = vrcp.f32 %v500_v5 }
 0x130   :  { %v678_v6 = vpop.eup %677 }
 0x131   :  { %v680_v7 = vpop.eup %679  ;;  %v509_v8 = vmul.f32 %v678_v6, %v236_v50 }
 0x132   :  { %v682_v9 = vpop.eup %681  ;;  %v510_v10 = vmul.f32 %v680_v7, %v238_v52 }
 0x133   :  { %v684_v11 = vpop.eup %683  ;;  %v511_v12 = vmul.f32 %v682_v9, %v240_v54  ;;  %v517_v13 = vmul.f32 %v509_v8, %v461_v58 }
 0x134   :  { %v512_v14 = vmul.f32 %v684_v11, %v242_v56  ;;  %v518_v15 = vmul.f32 %v510_v10, %v463_v59 }
 0x135   :  { %v519_v16 = vmul.f32 %v511_v12, %v465_v60 }
 0x136   :  { %v581_v17 = vpack.c.bf16 %v518_v15, %v517_v13  ;;  %v520_v18 = vmul.f32 %v512_v14, %v467_v61 }
 0x138   :  { %533 = vst [vmem:[%s852_s3] sm:$0xff] %v581_v17  ;;  %v582_v19 = vpack.c.bf16 %v520_v18, %v519_v16 }
 0x13a   :  { %534 = vst [vmem:[%s852_s3 + $0x8] sm:$0xff] %v582_v19 }

// kernel: llama_forward.31
= control target key start
LH: loop header
LB: loop body
LE: loop exit
PB: predicated region body
PF: predicated region fallthrough
CT: control target
= control target key end

     0   :  { %v199_v1 = vmov 0.0   ;;  %vm57_vm0 = vcmask 261120   ;;  %vm200_vm1 = vmmov 0   ;;  %vm17_vm2 = vcmask 523264   ;;  %s257_s0 = inlined_call_operand.vmem [shape: bf16[16,32], index: 0, kind: input, shape index: {}]   ;;  %s258_s1 = inlined_call_operand.vmem [shape: bf16[64,32], index: 1, kind: input, shape index: {}]   ;;  %s259_s2 = inlined_call_operand.hbm [shape: f32[16,64], index: 2, kind: output, shape index: {}]  }
   0x1   :  { %v170_v0 = vld [vmem:[%s258_s1] sm:$0xff]   ;;  %153 = vmatprep.subr.bf16.mxu0 %v199_v1  ;;  %v171_v3 = vld [vmem:[%s258_s1 + $0x8] sm:$0xff]   ;;  %161 = vmatprep.mubr.msk.bf16.mxu0 %vm200_vm1, %v199_v1 }
   0x2   :  { %v62_v2 = vsel %vm57_vm0, %v170_v0, 0 }
   0x3   :  { %154 = vmatpush3.bf16.xpose.msra.mxu0 %v62_v2 }
   0x4   :  { %155 = vmatprep.subr.bf16.mxu0 %v199_v1 }
   0x5   :  { %7 = vsyncpa [#allocation4], 0  ;;  %18 = vst.msk [vmem:[#allocation2] sm:$0xff] %vm17_vm2, %v199_v1  ;;  %v65_v4 = vsel %vm57_vm0, %v171_v3, 0  ;;  %v172_v5 = vld [vmem:[%s258_s1 + $0x10] sm:$0xff]   ;;  %v173_v7 = vld [vmem:[%s258_s1 + $0x18] sm:$0xff]  }
   0x6   :  { %19 = vst.msk [vmem:[#allocation2 + $0x8] sm:$0xff] %vm17_vm2, %v199_v1  ;;  %v68_v6 = vsel %vm57_vm0, %v172_v5, 0  ;;  %v71_v8 = vsel %vm57_vm0, %v173_v7, 0  ;;  %v174_v9 = vld [vmem:[%s257_s0] sm:$0xff]   ;;  %s201_s1 = smov [#allocation3]  }
   0x7   :  { %s131_s19 = sshll.u32 %s201_s1, 4  ;;  %s132_s19 = int_to_ptr.vmem [resolvable:$true] %s131_s19 }
   0x8   :  { %s175_s0 = scalar_lea.vmem %s132_s19, 256  ;;  %p180_p1 = scmp.lt.s32.totalorder %s132_s19, %s132_s19 }
   0x9   :  { %p176_p0 = scmp.ne.s32.totalorder %s132_s19, %s175_s0  ;;  %p181_p2 = scmp.lt.s32.totalorder %s175_s0, %s175_s0 }
   0xb   :  { %156 = vmatpush3.bf16.xpose.msra.mxu0 %v65_v4  ;;  %p182_p3 = por %p181_p2, %p180_p1 }
   0xc   :  { %157 = vmatprep.subr.bf16.mxu0 %v199_v1  ;;  %v20_v10 = vld [vmem:[#allocation2] sm:$0xff] }
   0xd   :  { %v21_v12 = vld [vmem:[#allocation2 + $0x8] sm:$0xff]  ;;  %p183_p4 = pnand %p182_p3, %p176_p0 }
  0x13   :  { %158 = vmatpush3.bf16.xpose.msra.mxu0 %v68_v6 }
  0x14   :  { %159 = vmatprep.subr.bf16.mxu0 %v199_v1 }
  0x1b   :  { %160 = vmatpush3.bf16.xpose.msra.mxu0 %v71_v8 }
  0x22   :  { %162 = vmatmul.mubr.msk.bf16.vlgmr.msra.gmra.mrb[0].mxu0 %vm57_vm0, %v174_v9 }
  0xf5   :  { %v107_v11 = vpop.f32.mrb[0].mxu0 }
  0xf6   :  { %v114_v13 = vadd.f32 %v107_v11, %v20_v10  ;;  %v163_v14 = vpop.f32.mrb[1].mxu0 }
  0xf7   :  { %v110_v15 = vpop.f32.mrb[2].mxu0 }
  0xf8   :  { %117 = vst.msk [vmem:[#allocation2] sm:$0xff] %vm17_vm2, %v114_v13  ;;  %v115_v16 = vadd.f32 %v110_v15, %v21_v12  ;;  %v164_v17 = vpop.f32.mrb[3].mxu0 }
  0xfa   :  { %118 = vst.msk [vmem:[#allocation2 + $0x8] sm:$0xff] %vm17_vm2, %v115_v16 }
  0xff   :  { %v122_v18 = vld [vmem:[#allocation2] sm:$0xff] }
 0x100   :  { %124 = vst.msk [vmem:[#allocation3] sm:$0xff] %vm17_vm2, %v122_v18 }
 0x101   :  { %v123_v19 = vld [vmem:[#allocation2 + $0x8] sm:$0xff] }
 0x102   :  { %125 = vst.msk [vmem:[#allocation3 + $0x8] sm:$0xff] %vm17_vm2, %v123_v19 }
 0x103   :  { %186 = shalt.err (!%p183_p4)
}
 0x104   :  { %s187_s22 = scalar_lea.hbm %s259_s2, 256 }
 0x105   :  { %p188_p5 = scmp.ne.s32.totalorder %s259_s2, %s187_s22  ;;  %p191_p6 = scmp.lt.u32.totalorder %s187_s22, %s259_s2 }
 0x107   :  { %p193_p7 = pnand %p191_p6, %p188_p5 }
 0x109   :  { %196 = shalt.err (!%p193_p7)
}
 0x10a   :  { %s202_s27 = smov 128   ;;  %s203_s28 = smov 8  }
 0x10b   :  { %137 = dma.vmem_to_hbm [thread:$0]  %s132_s19, 256, %s259_s2, [#allocation4], %s202_s27, %s202_s27, %s203_s28  }
 0x10c   :  { %197 = dma.done.wait [#allocation4], 256  }
 0x10d   :  { %198 = vsyncadd [#allocation4], 4294967040 }
 0x10e   :  { %141 = vsyncpa [#allocation4], 1 }

</bundles_post_ra>
